<compile_context>
chip_gen: v6e
topology: v6e:2x2x1
jax: 0.10.0
libtpu: 0.0.40
codegen_flags: <defaults>
</compile_context>

<pallas_src>
import jax
import jax.numpy as jnp
import numpy as np
from jax import lax
from jax.experimental import pallas as pl
from jax.experimental.pallas import tpu as pltpu

EPS = 1e-5  # PyTorch BatchNorm2d default


# ----------------------------------------------------------------------------- kernel
def residual_kernel(x_ref, w1b_ref, w2b_ref, w3b_ref, amean_ref,
                    b1_ref, g1_ref, be1_ref, b2_ref, g2_ref, be2_ref, b3_ref,
                    out_ref, xp_ref, yp_ref):
    f32 = jnp.float32
    nh, kin = x_ref.shape            # (N*H, W*Cin)
    r_tot = xp_ref.shape[0]          # N*(H+2)
    kout = out_ref.shape[1]          # W*Cout
    n_img = (r_tot - nh) // 2
    h = nh // n_img
    rp = h + 2                       # rows per image incl. 1-row halo top+bottom
    rows = r_tot - 2                 # "mid frame": flat halo-frame rows 1 .. r_tot-2

    # ---- fused H zero-padding: scatter input rows into a per-image halo frame ----
    # only the halo border rows are zeroed (no full-buffer zero fill).
    x = x_ref[...]
    for n in range(n_img):
        base = n * rp
        xp_ref[base:base + 1, :] = jnp.zeros((1, kin), f32)
        xp_ref[base + rp - 1:base + rp, :] = jnp.zeros((1, kin), f32)
        xp_ref[base + 1:base + 1 + h, :] = x[n * h:(n + 1) * h, :]

    # mid-frame rows that are real image rows (rows at image boundaries are halos)
    ridx = lax.broadcasted_iota(jnp.int32, (rows, 1), 0) + 1
    hh = ridx % rp
    valid = jnp.logical_and(hh >= 1, hh <= h)            # (rows, 1) bool

    def conv3x3(src_ref, band_ref, bias_row):
        # 3 row taps; each tap is ONE wide bf16 matmul against a banded weight
        # matrix (W taps + W zero padding folded in).  f32 accumulation.
        acc = jnp.dot(src_ref[0:rows, :].astype(jnp.bfloat16),
                      band_ref[0].astype(jnp.bfloat16),
                      preferred_element_type=f32)
        for t in (1, 2):
            acc = acc + jnp.dot(src_ref[t:t + rows, :].astype(jnp.bfloat16),
                                band_ref[t].astype(jnp.bfloat16),
                                preferred_element_type=f32)
        return acc + bias_row

    def batchnorm(v, gamma_row, beta_row):
        # single-pass stats: sum and sum-of-squares over valid rows, then fold the
        # W lane-groups per channel with one tiny matmul (keeps lanes dense).
        vz = jnp.where(valid, v, 0.0)
        s1 = jnp.sum(vz, axis=0, keepdims=True)                        # (1, kout)
        s2 = jnp.sum(vz * vz, axis=0, keepdims=True)                   # (1, kout)
        mean = jnp.dot(s1, amean_ref[...], preferred_element_type=f32)
        ex2 = jnp.dot(s2, amean_ref[...], preferred_element_type=f32)
        var = jnp.maximum(ex2 - mean * mean, 0.0)
        return (v - mean) * lax.rsqrt(var + EPS) * gamma_row + beta_row

    # ---- conv1 -> bn1 -> relu ----
    y = conv3x3(xp_ref, w1b_ref, b1_ref[...])
    y = batchnorm(y, g1_ref[...], be1_ref[...])
    y = jnp.maximum(y, 0.0)
    y = jnp.where(valid, y, 0.0)     # inter-image halo rows must stay exactly zero

    # ---- place Y in a halo frame for conv2; only the 2 outer border rows need
    #      explicit zeroing (interior halo rows are already zero inside y) ----
    yp_ref[0:1, :] = jnp.zeros((1, kout), f32)
    yp_ref[r_tot - 1:r_tot, :] = jnp.zeros((1, kout), f32)
    yp_ref[1:1 + rows, :] = y

    # ---- conv2 -> bn2 (no relu yet) ----
    z = conv3x3(yp_ref, w2b_ref, b2_ref[...])
    z = batchnorm(z, g2_ref[...], be2_ref[...])

    # ---- 1x1 skip conv on the original input (block-diagonal matmul) ----
    skip = jnp.dot(xp_ref[1:1 + rows, :].astype(jnp.bfloat16),
                   w3b_ref[...].astype(jnp.bfloat16),
                   preferred_element_type=f32) + b3_ref[...]

    out = jnp.maximum(z + skip, 0.0)

    # ---- lane-dense output store: (N*H, W*Cout), valid rows per image ----
    for n in range(n_img):
        out_ref[n * h:(n + 1) * h, :] = out[n * rp:n * rp + h, :]


# ------------------------------------------------------------------- weight transforms
def _banded_conv3_weights(w_hwio, width):
    """Fold the 3 W-taps (and W zero padding) of a 3x3 conv into 3 banded matrices.

    bands[t] has shape (width*Cin, width*Cout) such that for row tap t (row offset
    t-1):  out_row(h) += in_row(h + t - 1) @ bands[t].
    """
    kh, kw, cin, cout = w_hwio.shape
    w_np = np.asarray(w_hwio, dtype=np.float32)
    bands = np.zeros((kh, width * cin, width * cout), np.float32)
    for t in range(kh):
        for dw in range(kw):
            off = dw - (kw // 2)
            for wo in range(width):
                wi = wo + off
                if 0 <= wi < width:
                    bands[t, wi * cin:(wi + 1) * cin,
                          wo * cout:(wo + 1) * cout] = w_np[t, dw]
    return jnp.asarray(bands)


def _blockdiag_1x1_weights(w_io, width):
    cin, cout = w_io.shape
    w_np = np.asarray(w_io, dtype=np.float32)
    blk = np.zeros((width * cin, width * cout), np.float32)
    for ww in range(width):
        blk[ww * cin:(ww + 1) * cin, ww * cout:(ww + 1) * cout] = w_np
    return jnp.asarray(blk)


def _channel_mean_matrix(cout, width, count):
    """(W*Cout, W*Cout): right-multiplying a (1, W*Cout) row of per-lane sums yields
    the per-channel mean broadcast back to every lane of that channel."""
    ch = np.arange(width * cout) % cout
    a = (ch[:, None] == ch[None, :]).astype(np.float32) / float(count)
    return jnp.asarray(a)


# -------------------------------------------------------------------------- wrapper
def residual_pallas(x_nhwc, params):
    """x_nhwc: (N, H, W, Cin) float32. Returns (N, H, W, Cout) float32."""
    w1, b1, w2, b2, w3, b3, g1, be1, g2, be2 = params
    n, h, w, cin = x_nhwc.shape
    cout = w1.shape[-1]
    kin, kout = w * cin, w * cout
    r_tot = n * (h + 2)
    rows = r_tot - 2

    # planar lane-dense layout: one image row per matrix row, (W*C) on lanes
    x2 = x_nhwc.astype(jnp.float32).reshape(n * h, kin)

    w1b = _banded_conv3_weights(w1, w)                      # (3, kin, kout)
    w2b = _banded_conv3_weights(w2, w)                      # (3, kout, kout)
    w3b = _blockdiag_1x1_weights(w3, w)                     # (kin, kout)
    amean = _channel_mean_matrix(cout, w, n * h * w)        # (kout, kout)

    def row(v):  # per-channel vector -> lane-dense (1, W*Cout) row
        return jnp.tile(v.astype(jnp.float32), w).reshape(1, kout)

    args = (x2, w1b, w2b, w3b, amean,
            row(b1), row(g1), row(be1), row(b2), row(g2), row(be2), row(b3))

    vmem = pl.BlockSpec(memory_space=pltpu.MemorySpace.VMEM)
    flops = 2 * rows * (3 * kin * kout + 3 * kout * kout + kin * kout) \
        + 8 * kout * kout
    bytes_accessed = 4 * (x2.size + w1b.size + w2b.size + w3b.size + amean.size
                          + 7 * kout + n * h * kout)

    out2 = pl.pallas_call(
        residual_kernel,
        out_shape=jax.ShapeDtypeStruct((n * h, kout), jnp.float32),
        in_specs=[vmem] * len(args),
        out_specs=vmem,
        scratch_shapes=[pltpu.VMEM((r_tot, kin), jnp.float32),   # padded X frame
                        pltpu.VMEM((r_tot, kout), jnp.float32)], # padded Y frame
        cost_estimate=pl.CostEstimate(flops=flops, transcendentals=2 * kout,
                                      bytes_accessed=bytes_accessed),
    )(*args)
    return out2.reshape(n, h, w, cout)


# ------------------------------------------------------------------------- reference
def residual_ref(x_nhwc, params):
    """Pure-JAX f32 reference (matches PyTorch training-mode forward)."""
    w1, b1, w2, b2, w3, b3, g1, be1, g2, be2 = params
    dn = ('NHWC', 'HWIO', 'NHWC')

    def conv(x, w_, b_):
        y = lax.conv_general_dilated(x, w_, (1, 1), 'SAME', dimension_numbers=dn,
                                     precision=lax.Precision.HIGHEST)
        return y + b_.reshape(1, 1, 1, -1)

    def bn(x, g, be):
        m = jnp.mean(x, axis=(0, 1, 2), keepdims=True)
        v = jnp.mean((x - m) ** 2, axis=(0, 1, 2), keepdims=True)
        return (x - m) * lax.rsqrt(v + EPS) * g.reshape(1, 1, 1, -1) \
            + be.reshape(1, 1, 1, -1)

    y = jax.nn.relu(bn(conv(x_nhwc, w1, b1), g1, be1))
    y = bn(conv(y, w2, b2), g2, be2)
    skip = conv(x_nhwc, w3.reshape(1, 1, *w3.shape), b3)
    return jax.nn.relu(y + skip)


if __name__ == "__main__":
    # Module config: Residual(input_channels=4, num_channels=8, use_1x1conv=True, strides=1)
    N, Cin, H, W, Cout = 2, 4, 16, 16, 8

    key = jax.random.PRNGKey(0)
    ks = jax.random.split(key, 12)
    # Deterministic synthetic parameters (PyTorch OIHW weights stored as HWIO).
    w1 = 0.1 * jax.random.normal(ks[0], (3, 3, Cin, Cout), jnp.float32)
    b1 = 0.05 * jax.random.normal(ks[1], (Cout,), jnp.float32)
    w2 = 0.1 * jax.random.normal(ks[2], (3, 3, Cout, Cout), jnp.float32)
    b2 = 0.05 * jax.random.normal(ks[3], (Cout,), jnp.float32)
    w3 = 0.1 * jax.random.normal(ks[4], (Cin, Cout), jnp.float32)   # 1x1 conv
    b3 = 0.05 * jax.random.normal(ks[5], (Cout,), jnp.float32)
    g1 = 1.0 + 0.1 * jax.random.normal(ks[6], (Cout,), jnp.float32)
    be1 = 0.1 * jax.random.normal(ks[7], (Cout,), jnp.float32)
    g2 = 1.0 + 0.1 * jax.random.normal(ks[8], (Cout,), jnp.float32)
    be2 = 0.1 * jax.random.normal(ks[9], (Cout,), jnp.float32)
    params = (w1, b1, w2, b2, w3, b3, g1, be1, g2, be2)

    # PyTorch-style NCHW input -> NHWC for the kernel.
    x_nchw = jax.random.normal(ks[10], (N, Cin, H, W), jnp.float32)
    x_nhwc = jnp.transpose(x_nchw, (0, 2, 3, 1))

    out = jax.block_until_ready(residual_pallas(x_nhwc, params))
    ref = jax.block_until_ready(residual_ref(x_nhwc, params))

    # bf16 single-pass MXU matmuls (per the perf review) vs. f32 HIGHEST reference:
    # expected |err| ~ 1e-3..1e-2 at unit post-BN scale, far below any algorithmic bug.
    np.testing.assert_allclose(np.asarray(out), np.asarray(ref), rtol=2e-2, atol=2e-2)

    print("KERNEL_OK")
</pallas_src>

<mosaic_0001>
module attributes {stable_mosaic.version = 11 : i64} {
  func.func @residual_kernel(%arg0: memref<32x64xf32, #tpu.memory_space<vmem>>, %arg1: memref<3x64x128xf32, #tpu.memory_space<vmem>>, %arg2: memref<3x128x128xf32, #tpu.memory_space<vmem>>, %arg3: memref<64x128xf32, #tpu.memory_space<vmem>>, %arg4: memref<128x128xf32, #tpu.memory_space<vmem>>, %arg5: memref<1x128xf32, #tpu.memory_space<vmem>>, %arg6: memref<1x128xf32, #tpu.memory_space<vmem>>, %arg7: memref<1x128xf32, #tpu.memory_space<vmem>>, %arg8: memref<1x128xf32, #tpu.memory_space<vmem>>, %arg9: memref<1x128xf32, #tpu.memory_space<vmem>>, %arg10: memref<1x128xf32, #tpu.memory_space<vmem>>, %arg11: memref<1x128xf32, #tpu.memory_space<vmem>>, %arg12: memref<32x128xf32, #tpu.memory_space<vmem>>, %arg13: memref<36x64xf32, #tpu.memory_space<vmem>>, %arg14: memref<36x128xf32, #tpu.memory_space<vmem>>) attributes {dimension_semantics = [], scalar_prefetch = 0 : i64, scratch_operands = 2 : i64, tpu.core_type = #tpu.core_type<tc>} {
    %c0 = arith.constant 0 : index
    %c0_0 = arith.constant 0 : index
    %0 = vector.load %arg0[%c0, %c0_0] : memref<32x64xf32, #tpu.memory_space<vmem>>, vector<32x64xf32>
    %cst = arith.constant 0.000000e+00 : f32
    %1 = vector.broadcast %cst : f32 to vector<1x64xf32>
    %c0_1 = arith.constant 0 : index
    %c0_2 = arith.constant 0 : index
    %2 = vector.load %arg13[%c0_1, %c0_2] : memref<36x64xf32, #tpu.memory_space<vmem>>, vector<1x64xf32>
    tpu.vector_store %arg13[%c0_1, %c0_2], %1 {strides = array<i32>} : memref<36x64xf32, #tpu.memory_space<vmem>>, vector<1x64xf32>,
    %cst_3 = arith.constant 0.000000e+00 : f32
    %3 = vector.broadcast %cst_3 : f32 to vector<1x64xf32>
    %c17 = arith.constant 17 : index
    %c0_4 = arith.constant 0 : index
    %4 = vector.load %arg13[%c17, %c0_4] : memref<36x64xf32, #tpu.memory_space<vmem>>, vector<1x64xf32>
    tpu.vector_store %arg13[%c17, %c0_4], %3 {strides = array<i32>} : memref<36x64xf32, #tpu.memory_space<vmem>>, vector<1x64xf32>,
    %5 = vector.extract_strided_slice %0 {offsets = [0, 0], sizes = [16, 64], strides = [1, 1]} : vector<32x64xf32> to vector<16x64xf32>
    %c1 = arith.constant 1 : index
    %c0_5 = arith.constant 0 : index
    %6 = vector.load %arg13[%c1, %c0_5] : memref<36x64xf32, #tpu.memory_space<vmem>>, vector<16x64xf32>
    tpu.vector_store %arg13[%c1, %c0_5], %5 {strides = array<i32>} : memref<36x64xf32, #tpu.memory_space<vmem>>, vector<16x64xf32>,
    %cst_6 = arith.constant 0.000000e+00 : f32
    %7 = vector.broadcast %cst_6 : f32 to vector<1x64xf32>
    %c18 = arith.constant 18 : index
    %c0_7 = arith.constant 0 : index
    %8 = vector.load %arg13[%c18, %c0_7] : memref<36x64xf32, #tpu.memory_space<vmem>>, vector<1x64xf32>
    tpu.vector_store %arg13[%c18, %c0_7], %7 {strides = array<i32>} : memref<36x64xf32, #tpu.memory_space<vmem>>, vector<1x64xf32>,
    %cst_8 = arith.constant 0.000000e+00 : f32
    %9 = vector.broadcast %cst_8 : f32 to vector<1x64xf32>
    %c35 = arith.constant 35 : index
    %c0_9 = arith.constant 0 : index
    %10 = vector.load %arg13[%c35, %c0_9] : memref<36x64xf32, #tpu.memory_space<vmem>>, vector<1x64xf32>
    tpu.vector_store %arg13[%c35, %c0_9], %9 {strides = array<i32>} : memref<36x64xf32, #tpu.memory_space<vmem>>, vector<1x64xf32>,
    %11 = vector.extract_strided_slice %0 {offsets = [16, 0], sizes = [16, 64], strides = [1, 1]} : vector<32x64xf32> to vector<16x64xf32>
    %c19 = arith.constant 19 : index
    %c0_10 = arith.constant 0 : index
    %12 = vector.load %arg13[%c19, %c0_10] : memref<36x64xf32, #tpu.memory_space<vmem>>, vector<16x64xf32>
    tpu.vector_store %arg13[%c19, %c0_10], %11 {strides = array<i32>} : memref<36x64xf32, #tpu.memory_space<vmem>>, vector<16x64xf32>,
    %13 = tpu.iota {dimensions = array<i32: 0>} : vector<34x1xi32>
    %c1_i32 = arith.constant 1 : i32
    %14 = vector.broadcast %c1_i32 : i32 to vector<34x1xi32>
    %15 = arith.addi %13, %14 : vector<34x1xi32>
    %c18_i32 = arith.constant 18 : i32
    %c0_i32 = arith.constant 0 : i32
    %16 = arith.cmpi eq, %c18_i32, %c0_i32 : i32
    %c1_i32_11 = arith.constant 1 : i32
    %17 = arith.select %16, %c1_i32_11, %c18_i32 : i32
    %18 = vector.broadcast %17 : i32 to vector<34x1xi32>
    %19 = arith.remsi %15, %18 : vector<34x1xi32>
    %c0_i32_12 = arith.constant 0 : i32
    %20 = vector.broadcast %c0_i32_12 : i32 to vector<34x1xi32>
    %21 = arith.cmpi ne, %19, %20 : vector<34x1xi32>
    %c0_i32_13 = arith.constant 0 : i32
    %22 = vector.broadcast %c0_i32_13 : i32 to vector<34x1xi32>
    %23 = arith.cmpi slt, %19, %22 : vector<34x1xi32>
    %c0_i32_14 = arith.constant 0 : i32
    %24 = arith.cmpi slt, %17, %c0_i32_14 : i32
    %25 = vector.broadcast %24 : i1 to vector<34x1xi1>
    %26 = vector.broadcast %25 : vector<34x1xi1> to vector<34x1xi1>
    %27 = arith.xori %23, %26 : vector<34x1xi1>
    %28 = arith.andi %27, %21 : vector<34x1xi1>
    %29 = vector.broadcast %17 : i32 to vector<34x1xi32>
    %30 = arith.addi %19, %29 : vector<34x1xi32>
    %31 = arith.select %28, %30, %19 : vector<34x1xi1>, vector<34x1xi32>
    %c1_i32_15 = arith.constant 1 : i32
    %32 = vector.broadcast %c1_i32_15 : i32 to vector<34x1xi32>
    %33 = arith.cmpi sge, %31, %32 : vector<34x1xi32>
    %c16_i32 = arith.constant 16 : i32
    %34 = vector.broadcast %c16_i32 : i32 to vector<34x1xi32>
    %35 = arith.cmpi sle, %31, %34 : vector<34x1xi32>
    %36 = arith.andi %33, %35 : vector<34x1xi1>
    %c0_16 = arith.constant 0 : index
    %c0_17 = arith.constant 0 : index
    %37 = vector.load %arg5[%c0_16, %c0_17] : memref<1x128xf32, #tpu.memory_space<vmem>>, vector<1x128xf32>
    %c0_18 = arith.constant 0 : index
    %c0_19 = arith.constant 0 : index
    %38 = vector.load %arg13[%c0_18, %c0_19] : memref<36x64xf32, #tpu.memory_space<vmem>>, vector<34x64xf32>
    %39 = arith.truncf %38 : vector<34x64xf32> to vector<34x64xbf16>
    %c0_20 = arith.constant 0 : index
    %c0_21 = arith.constant 0 : index
    %c0_22 = arith.constant 0 : index
    %40 = vector.load %arg1[%c0_20, %c0_21, %c0_22] : memref<3x64x128xf32, #tpu.memory_space<vmem>>, vector<1x64x128xf32>
    %41 = vector.shape_cast %40 : vector<1x64x128xf32> to vector<64x128xf32>
    %42 = arith.truncf %41 : vector<64x128xf32> to vector<64x128xbf16>
    %cst_23 = arith.constant dense<0.000000e+00> : vector<34x128xf32>
    %43 = tpu.matmul %39, %42, %cst_23 {dimension_numbers = #tpu.dot_dimension_numbers<[1], [0], [0], [1], [0, 0, 1, 1], [], []>} : vector<34x64xbf16>, vector<64x128xbf16>, vector<34x128xf32> -> vector<34x128xf32>
    %c1_24 = arith.constant 1 : index
    %c0_25 = arith.constant 0 : index
    %44 = vector.load %arg13[%c1_24, %c0_25] : memref<36x64xf32, #tpu.memory_space<vmem>>, vector<34x64xf32>
    %45 = arith.truncf %44 : vector<34x64xf32> to vector<34x64xbf16>
    %c1_26 = arith.constant 1 : index
    %c0_27 = arith.constant 0 : index
    %c0_28 = arith.constant 0 : index
    %46 = vector.load %arg1[%c1_26, %c0_27, %c0_28] : memref<3x64x128xf32, #tpu.memory_space<vmem>>, vector<1x64x128xf32>
    %47 = vector.shape_cast %46 : vector<1x64x128xf32> to vector<64x128xf32>
    %48 = arith.truncf %47 : vector<64x128xf32> to vector<64x128xbf16>
    %cst_29 = arith.constant dense<0.000000e+00> : vector<34x128xf32>
    %49 = tpu.matmul %45, %48, %cst_29 {dimension_numbers = #tpu.dot_dimension_numbers<[1], [0], [0], [1], [0, 0, 1, 1], [], []>} : vector<34x64xbf16>, vector<64x128xbf16>, vector<34x128xf32> -> vector<34x128xf32>
    %50 = arith.addf %43, %49 : vector<34x128xf32>
    %c2 = arith.constant 2 : index
    %c0_30 = arith.constant 0 : index
    %51 = vector.load %arg13[%c2, %c0_30] : memref<36x64xf32, #tpu.memory_space<vmem>>, vector<34x64xf32>
    %52 = arith.truncf %51 : vector<34x64xf32> to vector<34x64xbf16>
    %c2_31 = arith.constant 2 : index
    %c0_32 = arith.constant 0 : index
    %c0_33 = arith.constant 0 : index
    %53 = vector.load %arg1[%c2_31, %c0_32, %c0_33] : memref<3x64x128xf32, #tpu.memory_space<vmem>>, vector<1x64x128xf32>
    %54 = vector.shape_cast %53 : vector<1x64x128xf32> to vector<64x128xf32>
    %55 = arith.truncf %54 : vector<64x128xf32> to vector<64x128xbf16>
    %cst_34 = arith.constant dense<0.000000e+00> : vector<34x128xf32>
    %56 = tpu.matmul %52, %55, %cst_34 {dimension_numbers = #tpu.dot_dimension_numbers<[1], [0], [0], [1], [0, 0, 1, 1], [], []>} : vector<34x64xbf16>, vector<64x128xbf16>, vector<34x128xf32> -> vector<34x128xf32>
    %57 = arith.addf %50, %56 : vector<34x128xf32>
    %58 = vector.broadcast %37 : vector<1x128xf32> to vector<34x128xf32>
    %59 = arith.addf %57, %58 : vector<34x128xf32>
    %c0_35 = arith.constant 0 : index
    %c0_36 = arith.constant 0 : index
    %60 = vector.load %arg6[%c0_35, %c0_36] : memref<1x128xf32, #tpu.memory_space<vmem>>, vector<1x128xf32>
    %c0_37 = arith.constant 0 : index
    %c0_38 = arith.constant 0 : index
    %61 = vector.load %arg7[%c0_37, %c0_38] : memref<1x128xf32, #tpu.memory_space<vmem>>, vector<1x128xf32>
    %cst_39 = arith.constant 0.000000e+00 : f32
    %62 = vector.shape_cast %36 : vector<34x1xi1> to vector<34x1xi1>
    %63 = vector.broadcast %62 : vector<34x1xi1> to vector<34x128xi1>
    %64 = vector.broadcast %cst_39 : f32 to vector<34x128xf32>
    %65 = arith.select %63, %59, %64 : vector<34x128xi1>, vector<34x128xf32>
    %cst_40 = arith.constant dense<0.000000e+00> : vector<128xf32>
    %66 = vector.multi_reduction <add>, %65, %cst_40 [0] : vector<34x128xf32> to vector<128xf32>
    %67 = vector.shape_cast %66 : vector<128xf32> to vector<1x128xf32>
    %68 = arith.mulf %65, %65 : vector<34x128xf32>
    %cst_41 = arith.constant dense<0.000000e+00> : vector<128xf32>
    %69 = vector.multi_reduction <add>, %68, %cst_41 [0] : vector<34x128xf32> to vector<128xf32>
    %70 = vector.shape_cast %69 : vector<128xf32> to vector<1x128xf32>
    %c0_42 = arith.constant 0 : index
    %c0_43 = arith.constant 0 : index
    %71 = vector.load %arg4[%c0_42, %c0_43] : memref<128x128xf32, #tpu.memory_space<vmem>>, vector<128x128xf32>
    %cst_44 = arith.constant dense<0.000000e+00> : vector<1x128xf32>
    %72 = tpu.matmul %67, %71, %cst_44 {dimension_numbers = #tpu.dot_dimension_numbers<[1], [0], [0], [1], [0, 0, 1, 1], [], []>} : vector<1x128xf32>, vector<128x128xf32>, vector<1x128xf32> -> vector<1x128xf32>
    %c0_45 = arith.constant 0 : index
    %c0_46 = arith.constant 0 : index
    %73 = vector.load %arg4[%c0_45, %c0_46] : memref<128x128xf32, #tpu.memory_space<vmem>>, vector<128x128xf32>
    %cst_47 = arith.constant dense<0.000000e+00> : vector<1x128xf32>
    %74 = tpu.matmul %70, %73, %cst_47 {dimension_numbers = #tpu.dot_dimension_numbers<[1], [0], [0], [1], [0, 0, 1, 1], [], []>} : vector<1x128xf32>, vector<128x128xf32>, vector<1x128xf32> -> vector<1x128xf32>
    %75 = arith.mulf %72, %72 : vector<1x128xf32>
    %76 = arith.subf %74, %75 : vector<1x128xf32>
    %cst_48 = arith.constant 0.000000e+00 : f32
    %77 = vector.broadcast %cst_48 : f32 to vector<1x128xf32>
    %78 = arith.maximumf %76, %77 : vector<1x128xf32>
    %79 = vector.broadcast %72 : vector<1x128xf32> to vector<34x128xf32>
    %80 = arith.subf %59, %79 : vector<34x128xf32>
    %cst_49 = arith.constant 9.99999974E-6 : f32
    %81 = vector.broadcast %cst_49 : f32 to vector<1x128xf32>
    %82 = arith.addf %78, %81 : vector<1x128xf32>
    %83 = math.rsqrt %82 : vector<1x128xf32>
    %84 = vector.broadcast %83 : vector<1x128xf32> to vector<34x128xf32>
    %85 = arith.mulf %80, %84 : vector<34x128xf32>
    %86 = vector.broadcast %60 : vector<1x128xf32> to vector<34x128xf32>
    %87 = arith.mulf %85, %86 : vector<34x128xf32>
    %88 = vector.broadcast %61 : vector<1x128xf32> to vector<34x128xf32>
    %89 = arith.addf %87, %88 : vector<34x128xf32>
    %cst_50 = arith.constant 0.000000e+00 : f32
    %90 = vector.broadcast %cst_50 : f32 to vector<34x128xf32>
    %91 = arith.maximumf %89, %90 : vector<34x128xf32>
    %cst_51 = arith.constant 0.000000e+00 : f32
    %92 = vector.shape_cast %36 : vector<34x1xi1> to vector<34x1xi1>
    %93 = vector.broadcast %92 : vector<34x1xi1> to vector<34x128xi1>
    %94 = vector.broadcast %cst_51 : f32 to vector<34x128xf32>
    %95 = arith.select %93, %91, %94 : vector<34x128xi1>, vector<34x128xf32>
    %cst_52 = arith.constant 0.000000e+00 : f32
    %96 = vector.broadcast %cst_52 : f32 to vector<1x128xf32>
    %c0_53 = arith.constant 0 : index
    %c0_54 = arith.constant 0 : index
    %97 = vector.load %arg14[%c0_53, %c0_54] : memref<36x128xf32, #tpu.memory_space<vmem>>, vector<1x128xf32>
    tpu.vector_store %arg14[%c0_53, %c0_54], %96 {strides = array<i32>} : memref<36x128xf32, #tpu.memory_space<vmem>>, vector<1x128xf32>,
    %cst_55 = arith.constant 0.000000e+00 : f32
    %98 = vector.broadcast %cst_55 : f32 to vector<1x128xf32>
    %c35_56 = arith.constant 35 : index
    %c0_57 = arith.constant 0 : index
    %99 = vector.load %arg14[%c35_56, %c0_57] : memref<36x128xf32, #tpu.memory_space<vmem>>, vector<1x128xf32>
    tpu.vector_store %arg14[%c35_56, %c0_57], %98 {strides = array<i32>} : memref<36x128xf32, #tpu.memory_space<vmem>>, vector<1x128xf32>,
    %c1_58 = arith.constant 1 : index
    %c0_59 = arith.constant 0 : index
    %100 = vector.load %arg14[%c1_58, %c0_59] : memref<36x128xf32, #tpu.memory_space<vmem>>, vector<34x128xf32>
    tpu.vector_store %arg14[%c1_58, %c0_59], %95 {strides = array<i32>} : memref<36x128xf32, #tpu.memory_space<vmem>>, vector<34x128xf32>,
    %c0_60 = arith.constant 0 : index
    %c0_61 = arith.constant 0 : index
    %101 = vector.load %arg8[%c0_60, %c0_61] : memref<1x128xf32, #tpu.memory_space<vmem>>, vector<1x128xf32>
    %c0_62 = arith.constant 0 : index
    %c0_63 = arith.constant 0 : index
    %102 = vector.load %arg14[%c0_62, %c0_63] : memref<36x128xf32, #tpu.memory_space<vmem>>, vector<34x128xf32>
    %103 = arith.truncf %102 : vector<34x128xf32> to vector<34x128xbf16>
    %c0_64 = arith.constant 0 : index
    %c0_65 = arith.constant 0 : index
    %c0_66 = arith.constant 0 : index
    %104 = vector.load %arg2[%c0_64, %c0_65, %c0_66] : memref<3x128x128xf32, #tpu.memory_space<vmem>>, vector<1x128x128xf32>
    %105 = vector.shape_cast %104 : vector<1x128x128xf32> to vector<128x128xf32>
    %106 = arith.truncf %105 : vector<128x128xf32> to vector<128x128xbf16>
    %cst_67 = arith.constant dense<0.000000e+00> : vector<34x128xf32>
    %107 = tpu.matmul %103, %106, %cst_67 {dimension_numbers = #tpu.dot_dimension_numbers<[1], [0], [0], [1], [0, 0, 1, 1], [], []>} : vector<34x128xbf16>, vector<128x128xbf16>, vector<34x128xf32> -> vector<34x128xf32>
    %c1_68 = arith.constant 1 : index
    %c0_69 = arith.constant 0 : index
    %108 = vector.load %arg14[%c1_68, %c0_69] : memref<36x128xf32, #tpu.memory_space<vmem>>, vector<34x128xf32>
    %109 = arith.truncf %108 : vector<34x128xf32> to vector<34x128xbf16>
    %c1_70 = arith.constant 1 : index
    %c0_71 = arith.constant 0 : index
    %c0_72 = arith.constant 0 : index
    %110 = vector.load %arg2[%c1_70, %c0_71, %c0_72] : memref<3x128x128xf32, #tpu.memory_space<vmem>>, vector<1x128x128xf32>
    %111 = vector.shape_cast %110 : vector<1x128x128xf32> to vector<128x128xf32>
    %112 = arith.truncf %111 : vector<128x128xf32> to vector<128x128xbf16>
    %cst_73 = arith.constant dense<0.000000e+00> : vector<34x128xf32>
    %113 = tpu.matmul %109, %112, %cst_73 {dimension_numbers = #tpu.dot_dimension_numbers<[1], [0], [0], [1], [0, 0, 1, 1], [], []>} : vector<34x128xbf16>, vector<128x128xbf16>, vector<34x128xf32> -> vector<34x128xf32>
    %114 = arith.addf %107, %113 : vector<34x128xf32>
    %c2_74 = arith.constant 2 : index
    %c0_75 = arith.constant 0 : index
    %115 = vector.load %arg14[%c2_74, %c0_75] : memref<36x128xf32, #tpu.memory_space<vmem>>, vector<34x128xf32>
    %116 = arith.truncf %115 : vector<34x128xf32> to vector<34x128xbf16>
    %c2_76 = arith.constant 2 : index
    %c0_77 = arith.constant 0 : index
    %c0_78 = arith.constant 0 : index
    %117 = vector.load %arg2[%c2_76, %c0_77, %c0_78] : memref<3x128x128xf32, #tpu.memory_space<vmem>>, vector<1x128x128xf32>
    %118 = vector.shape_cast %117 : vector<1x128x128xf32> to vector<128x128xf32>
    %119 = arith.truncf %118 : vector<128x128xf32> to vector<128x128xbf16>
    %cst_79 = arith.constant dense<0.000000e+00> : vector<34x128xf32>
    %120 = tpu.matmul %116, %119, %cst_79 {dimension_numbers = #tpu.dot_dimension_numbers<[1], [0], [0], [1], [0, 0, 1, 1], [], []>} : vector<34x128xbf16>, vector<128x128xbf16>, vector<34x128xf32> -> vector<34x128xf32>
    %121 = arith.addf %114, %120 : vector<34x128xf32>
    %122 = vector.broadcast %101 : vector<1x128xf32> to vector<34x128xf32>
    %123 = arith.addf %121, %122 : vector<34x128xf32>
    %c0_80 = arith.constant 0 : index
    %c0_81 = arith.constant 0 : index
    %124 = vector.load %arg9[%c0_80, %c0_81] : memref<1x128xf32, #tpu.memory_space<vmem>>, vector<1x128xf32>
    %c0_82 = arith.constant 0 : index
    %c0_83 = arith.constant 0 : index
    %125 = vector.load %arg10[%c0_82, %c0_83] : memref<1x128xf32, #tpu.memory_space<vmem>>, vector<1x128xf32>
    %cst_84 = arith.constant 0.000000e+00 : f32
    %126 = vector.shape_cast %36 : vector<34x1xi1> to vector<34x1xi1>
    %127 = vector.broadcast %126 : vector<34x1xi1> to vector<34x128xi1>
    %128 = vector.broadcast %cst_84 : f32 to vector<34x128xf32>
    %129 = arith.select %127, %123, %128 : vector<34x128xi1>, vector<34x128xf32>
    %cst_85 = arith.constant dense<0.000000e+00> : vector<128xf32>
    %130 = vector.multi_reduction <add>, %129, %cst_85 [0] : vector<34x128xf32> to vector<128xf32>
    %131 = vector.shape_cast %130 : vector<128xf32> to vector<1x128xf32>
    %132 = arith.mulf %129, %129 : vector<34x128xf32>
    %cst_86 = arith.constant dense<0.000000e+00> : vector<128xf32>
    %133 = vector.multi_reduction <add>, %132, %cst_86 [0] : vector<34x128xf32> to vector<128xf32>
    %134 = vector.shape_cast %133 : vector<128xf32> to vector<1x128xf32>
    %c0_87 = arith.constant 0 : index
    %c0_88 = arith.constant 0 : index
    %135 = vector.load %arg4[%c0_87, %c0_88] : memref<128x128xf32, #tpu.memory_space<vmem>>, vector<128x128xf32>
    %cst_89 = arith.constant dense<0.000000e+00> : vector<1x128xf32>
    %136 = tpu.matmul %131, %135, %cst_89 {dimension_numbers = #tpu.dot_dimension_numbers<[1], [0], [0], [1], [0, 0, 1, 1], [], []>} : vector<1x128xf32>, vector<128x128xf32>, vector<1x128xf32> -> vector<1x128xf32>
    %c0_90 = arith.constant 0 : index
    %c0_91 = arith.constant 0 : index
    %137 = vector.load %arg4[%c0_90, %c0_91] : memref<128x128xf32, #tpu.memory_space<vmem>>, vector<128x128xf32>
    %cst_92 = arith.constant dense<0.000000e+00> : vector<1x128xf32>
    %138 = tpu.matmul %134, %137, %cst_92 {dimension_numbers = #tpu.dot_dimension_numbers<[1], [0], [0], [1], [0, 0, 1, 1], [], []>} : vector<1x128xf32>, vector<128x128xf32>, vector<1x128xf32> -> vector<1x128xf32>
    %139 = arith.mulf %136, %136 : vector<1x128xf32>
    %140 = arith.subf %138, %139 : vector<1x128xf32>
    %cst_93 = arith.constant 0.000000e+00 : f32
    %141 = vector.broadcast %cst_93 : f32 to vector<1x128xf32>
    %142 = arith.maximumf %140, %141 : vector<1x128xf32>
    %143 = vector.broadcast %136 : vector<1x128xf32> to vector<34x128xf32>
    %144 = arith.subf %123, %143 : vector<34x128xf32>
    %cst_94 = arith.constant 9.99999974E-6 : f32
    %145 = vector.broadcast %cst_94 : f32 to vector<1x128xf32>
    %146 = arith.addf %142, %145 : vector<1x128xf32>
    %147 = math.rsqrt %146 : vector<1x128xf32>
    %148 = vector.broadcast %147 : vector<1x128xf32> to vector<34x128xf32>
    %149 = arith.mulf %144, %148 : vector<34x128xf32>
    %150 = vector.broadcast %124 : vector<1x128xf32> to vector<34x128xf32>
    %151 = arith.mulf %149, %150 : vector<34x128xf32>
    %152 = vector.broadcast %125 : vector<1x128xf32> to vector<34x128xf32>
    %153 = arith.addf %151, %152 : vector<34x128xf32>
    %c1_95 = arith.constant 1 : index
    %c0_96 = arith.constant 0 : index
    %154 = vector.load %arg13[%c1_95, %c0_96] : memref<36x64xf32, #tpu.memory_space<vmem>>, vector<34x64xf32>
    %155 = arith.truncf %154 : vector<34x64xf32> to vector<34x64xbf16>
    %c0_97 = arith.constant 0 : index
    %c0_98 = arith.constant 0 : index
    %156 = vector.load %arg3[%c0_97, %c0_98] : memref<64x128xf32, #tpu.memory_space<vmem>>, vector<64x128xf32>
    %157 = arith.truncf %156 : vector<64x128xf32> to vector<64x128xbf16>
    %cst_99 = arith.constant dense<0.000000e+00> : vector<34x128xf32>
    %158 = tpu.matmul %155, %157, %cst_99 {dimension_numbers = #tpu.dot_dimension_numbers<[1], [0], [0], [1], [0, 0, 1, 1], [], []>} : vector<34x64xbf16>, vector<64x128xbf16>, vector<34x128xf32> -> vector<34x128xf32>
    %c0_100 = arith.constant 0 : index
    %c0_101 = arith.constant 0 : index
    %159 = vector.load %arg11[%c0_100, %c0_101] : memref<1x128xf32, #tpu.memory_space<vmem>>, vector<1x128xf32>
    %160 = vector.broadcast %159 : vector<1x128xf32> to vector<34x128xf32>
    %161 = arith.addf %158, %160 : vector<34x128xf32>
    %162 = arith.addf %153, %161 : vector<34x128xf32>
    %cst_102 = arith.constant 0.000000e+00 : f32
    %163 = vector.broadcast %cst_102 : f32 to vector<34x128xf32>
    %164 = arith.maximumf %162, %163 : vector<34x128xf32>
    %165 = vector.extract_strided_slice %164 {offsets = [0, 0], sizes = [16, 128], strides = [1, 1]} : vector<34x128xf32> to vector<16x128xf32>
    %c0_103 = arith.constant 0 : index
    %c0_104 = arith.constant 0 : index
    %166 = vector.load %arg12[%c0_103, %c0_104] : memref<32x128xf32, #tpu.memory_space<vmem>>, vector<16x128xf32>
    tpu.vector_store %arg12[%c0_103, %c0_104], %165 {strides = array<i32>} : memref<32x128xf32, #tpu.memory_space<vmem>>, vector<16x128xf32>,
    %167 = vector.extract_strided_slice %164 {offsets = [18, 0], sizes = [16, 128], strides = [1, 1]} : vector<34x128xf32> to vector<16x128xf32>
    %c16 = arith.constant 16 : index
    %c0_105 = arith.constant 0 : index
    %168 = vector.load %arg12[%c16, %c0_105] : memref<32x128xf32, #tpu.memory_space<vmem>>, vector<16x128xf32>
    tpu.vector_store %arg12[%c16, %c0_105], %167 {strides = array<i32>} : memref<32x128xf32, #tpu.memory_space<vmem>>, vector<16x128xf32>,
    return
  }
}

</mosaic_0001>

<bundles_post_ra>
// kernel: tpu_custom_call.1
= control target key start
LH: loop header
LB: loop body
LE: loop exit
PB: predicated region body
PF: predicated region fallthrough
CT: control target
= control target key end

     0   :  { %17 = vsyncpa [#allocation5], 0  ;;  %s2584_s0 = inlined_call_operand.hbm [shape: f32[32,64], index: 0, kind: input, shape index: {}]   ;;  %s2585_s1 = inlined_call_operand.hbm [shape: f32[3,64,128], index: 1, kind: input, shape index: {}]   ;;  %s2586_s2 = inlined_call_operand.hbm [shape: f32[3,128,128], index: 2, kind: input, shape index: {}]   ;;  %s2587_s3 = inlined_call_operand.hbm [shape: f32[64,128], index: 3, kind: input, shape index: {}]   ;;  %s2588_s4 = inlined_call_operand.hbm [shape: f32[128,128], index: 4, kind: input, shape index: {}]   ;;  %s2589_s5 = inlined_call_operand.vmem [shape: f32[1,128], index: 5, kind: input, shape index: {}]   ;;  %s2590_s6 = inlined_call_operand.vmem [shape: f32[1,128], index: 6, kind: input, shape index: {}]   ;;  %s2591_s7 = inlined_call_operand.vmem [shape: f32[1,128], index: 7, kind: input, shape index: {}]   ;;  %s2592_s8 = inlined_call_operand.vmem [shape: f32[1,128], index: 8, kind: input, shape index: {}]   ;;  %s2593_s9 = inlined_call_operand.vmem [shape: f32[1,128], index: 9, kind: input, shape index: {}]   ;;  %s2594_s10 = inlined_call_operand.vmem [shape: f32[1,128], index: 10, kind: input, shape index: {}]   ;;  %s2595_s11 = inlined_call_operand.vmem [shape: f32[1,128], index: 11, kind: input, shape index: {}]   ;;  %s2596_s12 = inlined_call_operand.hbm [shape: f32[32,128], index: 12, kind: output, shape index: {}]  }
   0x1   :  { %18 = vsyncpa [#allocation8], 0 }
   0x2   :  { %19 = vsyncpa [#allocation11], 0 }
   0x3   :  { %20 = vsyncpa [#allocation6], 0  ;;  %s2030_s21 = smov [#allocation7]   ;;  %s2031_s23 = smov [#allocation10]  }
   0x4   :  { %s38_s22 = sshll.u32 %s2030_s21, 4  ;;  %s62_s24 = sshll.u32 %s2031_s23, 4  ;;  %s39_s22 = int_to_ptr.vmem [resolvable:$true] %s38_s22  ;;  %s63_s24 = int_to_ptr.vmem [resolvable:$true] %s62_s24 }
   0x5   :  { %s1910_s25 = scalar_lea.vmem %s39_s22, 3072  ;;  %p1915_p1 = scmp.lt.s32.totalorder %s39_s22, %s39_s22 }
   0x6   :  { %p1911_p0 = scmp.ne.s32.totalorder %s39_s22, %s1910_s25  ;;  %p1916_p2 = scmp.lt.s32.totalorder %s1910_s25, %s1910_s25 }
   0x8   :  { %p1917_p3 = por %p1916_p2, %p1915_p1 }
   0xa   :  { %p1918_p4 = pnand %p1917_p3, %p1911_p0 }
   0xc   :  { %1921 = shalt.err (!%p1918_p4)
}
   0xd   :  { %s2032_s26 = smov 128   ;;  %s2033_s27 = smov 8  }
   0xe   :  { %44 = dma.hbm_to_vmem [thread:$0]  %s2585_s1, 3072, %s39_s22, [#allocation8], %s2032_s26, %s2032_s26, %s2033_s27  }
   0xf   :  { %s1930_s30 = scalar_lea.vmem %s63_s24, 1024  ;;  %p1935_p6 = scmp.lt.s32.totalorder %s63_s24, %s63_s24 }
  0x10   :  { %p1931_p5 = scmp.ne.s32.totalorder %s63_s24, %s1930_s30  ;;  %p1936_p7 = scmp.lt.s32.totalorder %s1930_s30, %s1930_s30 }
  0x12   :  { %p1937_p8 = por %p1936_p7, %p1935_p6 }
  0x14   :  { %p1938_p9 = pnand %p1937_p8, %p1931_p5 }
  0x16   :  { %1941 = shalt.err (!%p1938_p9)
}
  0x17   :  { %68 = dma.hbm_to_vmem [thread:$0]  %s2587_s3, 1024, %s63_s24, [#allocation11], %s2032_s26, %s2032_s26, %s2033_s27  }
  0x18   :  { %s2034_s15 = smov [#allocation4]   ;;  %s2035_s17 = smov [#allocation9]  }
  0x19   :  { %s26_s16 = sshll.u32 %s2034_s15, 4  ;;  %s50_s18 = sshll.u32 %s2035_s17, 4  ;;  %s27_s16 = int_to_ptr.vmem [resolvable:$true] %s26_s16  ;;  %s51_s18 = int_to_ptr.vmem [resolvable:$true] %s50_s18 }
  0x1a   :  { %s1950_s1 = scalar_lea.vmem %s27_s16, 512  ;;  %p1955_p11 = scmp.lt.s32.totalorder %s27_s16, %s27_s16 }
  0x1b   :  { %p1951_p10 = scmp.ne.s32.totalorder %s27_s16, %s1950_s1  ;;  %p1956_p12 = scmp.lt.s32.totalorder %s1950_s1, %s1950_s1 }
  0x1d   :  { %p1957_p13 = por %p1956_p12, %p1955_p11 }
  0x1f   :  { %p1958_p0 = pnand %p1957_p13, %p1951_p10 }
  0x21   :  { %1961 = shalt.err (!%p1958_p0)
}
  0x22   :  { %32 = dma.hbm_to_vmem [thread:$0]  %s2584_s0, 512, %s27_s16, [#allocation5], %s2032_s26, %s2032_s26, %s2033_s27  }
  0x23   :  { %s1970_s3 = scalar_lea.vmem %s51_s18, 6144  ;;  %p1975_p2 = scmp.lt.s32.totalorder %s51_s18, %s51_s18 }
  0x24   :  { %p1971_p1 = scmp.ne.s32.totalorder %s51_s18, %s1970_s3  ;;  %p1976_p3 = scmp.lt.s32.totalorder %s1970_s3, %s1970_s3 }
  0x26   :  { %p1977_p4 = por %p1976_p3, %p1975_p2 }
  0x28   :  { %p1978_p5 = pnand %p1977_p4, %p1971_p1 }
  0x2a   :  { %1981 = shalt.err (!%p1978_p5)
}
  0x2b   :  { %56 = dma.hbm_to_vmem [thread:$0]  %s2586_s2, 6144, %s51_s18, [#allocation8], %s2032_s26, %s2032_s26, %s2033_s27  }
  0x2c   :  { %s2036_s23 = smov [#allocation12]  }
  0x2d   :  { %s74_s24 = sshll.u32 %s2036_s23, 4  ;;  %s75_s24 = int_to_ptr.vmem [resolvable:$true] %s74_s24 }
  0x2e   :  { %s1990_s25 = scalar_lea.vmem %s75_s24, 2048  ;;  %p1995_p7 = scmp.lt.s32.totalorder %s75_s24, %s75_s24 }
  0x2f   :  { %p1991_p6 = scmp.ne.s32.totalorder %s75_s24, %s1990_s25  ;;  %p1996_p8 = scmp.lt.s32.totalorder %s1990_s25, %s1990_s25 }
  0x31   :  { %p1997_p9 = por %p1996_p8, %p1995_p7 }
  0x33   :  { %p1998_p10 = pnand %p1997_p9, %p1991_p6 }
  0x35   :  { %2001 = shalt.err (!%p1998_p10)
}
  0x36   :  { %80 = dma.hbm_to_vmem [thread:$0]  %s2588_s4, 2048, %s75_s24, [#allocation11], %s2032_s26, %s2032_s26, %s2033_s27  }
  0x37   :  { %2022 = dma.done.wait [#allocation5], 512  }
  0x38   :  { %2023 = vsyncadd [#allocation5], 4294966784 }
  0x39   :  { %2024 = dma.done.wait [#allocation8], 9216  }
  0x3a   :  { %2025 = vsyncadd [#allocation8], 4294958080 }
  0x3b   :  { %2026 = dma.done.wait [#allocation11], 3072  }
  0x3c   :  { %2027 = vsyncadd [#allocation11], 4294964224  ;;  %vm115_vm0 = vcmask 516096   ;;  %v2037_v0 = vmov 0.0   ;;  %vm2038_vm1 = vmmov 0   ;;  %v267_v1 = vld [vmem:[#allocation7 + $0x70] sm:$0xff] }
  0x3d   :  { %1560 = vmatprep.subr.bf16.mxu0 %v2037_v0  ;;  %761 = vst [vmem:[#allocation3] sm:$0x1] %v2037_v0  ;;  %762 = vst [vmem:[#allocation3 + $0x23] sm:$0x1] %v2037_v0  ;;  %1864 = vmatprep.subr.bf16.mxu1 %v2037_v0  ;;  %v268_v2 = vld [vmem:[#allocation7 + $0x78] sm:$0xff]  ;;  %v265_v3 = vld [vmem:[#allocation7 + $0x60] sm:$0xff] }
  0x3e   :  { %117 = vst.msk [vmem:[#allocation2 + $0x11] sm:$0x1] %vm115_vm0, %v2037_v0  ;;  %121 = vst.msk [vmem:[#allocation2 + $0x12] sm:$0x1] %vm115_vm0, %v2037_v0  ;;  %1568 = vmatprep.mubr.msk.bf16.mxu0 %vm2038_vm1, %v2037_v0  ;;  %1576 = vmatprep.mubr.msk.bf16.mxu1 %vm2038_vm1, %v2037_v0  ;;  %vm118_vm2 = vcmask 523264   ;;  %v272_v4 = vpack.c.bf16 %v268_v2, %v267_v1  ;;  %v266_v5 = vld [vmem:[#allocation7 + $0x68] sm:$0xff] }
  0x3f   :  { %116 = vst.msk [vmem:[#allocation2] sm:$0x1] %vm115_vm0, %v2037_v0  ;;  %122 = vst.msk [vmem:[#allocation2 + $0x23] sm:$0x1] %vm115_vm0, %v2037_v0  ;;  %v111_v6 = vld [vmem:[#allocation4] sm:$0xff]  ;;  %v271_v7 = vpack.c.bf16 %v266_v5, %v265_v3  ;;  %v112_v8 = vld [vmem:[#allocation4 + $0x8] sm:$0xff] }
  0x40   :  { %1561 = vmatpush3.bf16.msra.mxu0 %v272_v4  ;;  %1868 = vmatpush3.bf16.msra.mxu1 %v272_v4  ;;  %119 = vst.msk [vmem:[#allocation2 + $0x1] sm:$0xff] %vm118_vm2, %v111_v6  ;;  %v114_v9 = vld [vmem:[#allocation4 + $0x18] sm:$0xff]  ;;  %v263_v10 = vld [vmem:[#allocation7 + $0x50] sm:$0xff]  ;;  %120 = vst.msk [vmem:[#allocation2 + $0x9] sm:$0xff] %vm118_vm2, %v112_v8 }
  0x41   :  { %1562 = vmatprep.subr.bf16.mxu0 %v2037_v0  ;;  %1865 = vmatprep.subr.bf16.mxu1 %v2037_v0  ;;  %v264_v11 = vld [vmem:[#allocation7 + $0x58] sm:$0xff]  ;;  %124 = vst.msk [vmem:[#allocation2 + $0x1b] sm:$0xff] %vm118_vm2, %v114_v9  ;;  %v113_v12 = vld [vmem:[#allocation4 + $0x10] sm:$0xff]  ;;  %v261_v14 = vld [vmem:[#allocation7 + $0x40] sm:$0xff] }
  0x42   :  { %v270_v13 = vpack.c.bf16 %v264_v11, %v263_v10  ;;  %123 = vst.msk [vmem:[#allocation2 + $0x13] sm:$0xff] %vm118_vm2, %v113_v12  ;;  %v262_v15 = vld [vmem:[#allocation7 + $0x48] sm:$0xff]  ;;  %v246_v16 = vld [vmem:[#allocation7 + $0x30] sm:$0xff]  ;;  %v247_v21 = vld [vmem:[#allocation7 + $0x38] sm:$0xff] }
  0x43   :  { %v269_v17 = vpack.c.bf16 %v262_v15, %v261_v14  ;;  %v418_v22 = vld [vmem:[#allocation7 + $0xb0] sm:$0xff]  ;;  %v419_v23 = vld [vmem:[#allocation7 + $0xb8] sm:$0xff]  ;;  %v251_v26 = vpack.c.bf16 %v247_v21, %v246_v16  ;;  %v244_v28 = vld [vmem:[#allocation7 + $0x20] sm:$0xff] }
  0x44   :  { %1563 = vmatpush3.bf16.msra.mxu0 %v271_v7  ;;  %1869 = vmatpush3.bf16.msra.mxu1 %v271_v7  ;;  %v423_v27 = vpack.c.bf16 %v419_v23, %v418_v22  ;;  %v245_v29 = vld [vmem:[#allocation7 + $0x28] sm:$0xff]  ;;  %v416_v30 = vld [vmem:[#allocation7 + $0xa0] sm:$0xff]  ;;  %v242_v36 = vld [vmem:[#allocation7 + $0x10] sm:$0xff] }
  0x45   :  { %1564 = vmatprep.subr.bf16.mxu0 %v2037_v0  ;;  %1866 = vmatprep.subr.bf16.mxu1 %v2037_v0  ;;  %v417_v31 = vld [vmem:[#allocation7 + $0xa8] sm:$0xff]  ;;  %v250_v32 = vpack.c.bf16 %v245_v29, %v244_v28  ;;  %v243_v37 = vld [vmem:[#allocation7 + $0x18] sm:$0xff]  ;;  %v414_v38 = vld [vmem:[#allocation7 + $0x90] sm:$0xff] }
  0x46   :  { %v422_v33 = vpack.c.bf16 %v417_v31, %v416_v30  ;;  %v415_v39 = vld [vmem:[#allocation7 + $0x98] sm:$0xff]  ;;  %v249_v41 = vpack.c.bf16 %v243_v37, %v242_v36  ;;  %v240_v43 = vld [vmem:[#allocation7] sm:$0xff]  ;;  %v241_v44 = vld [vmem:[#allocation7 + $0x8] sm:$0xff] }
  0x47   :  { %v252_v18 = vld [vmem:[#allocation2 + $0x1] sm:$0xff]  ;;  %v253_v19 = vld [vmem:[#allocation2 + $0x9] sm:$0xff]  ;;  %v421_v42 = vpack.c.bf16 %v415_v39, %v414_v38  ;;  %v413_v46 = vld [vmem:[#allocation7 + $0x88] sm:$0xff]  ;;  %v248_v48 = vpack.c.bf16 %v241_v44, %v240_v43 }
  0x48   :  { %1565 = vmatpush3.bf16.msra.mxu0 %v270_v13  ;;  %1870 = vmatpush3.bf16.msra.mxu1 %v270_v13  ;;  %v256_v20 = vld [vmem:[#allocation2 + $0x21] sm:$0x3]  ;;  %v257_v24 = vpack.c.bf16 %v253_v19, %v252_v18  ;;  %v412_v45 = vld [vmem:[#allocation7 + $0x80] sm:$0xff]  ;;  %v233_v50 = vld [vmem:[#allocation2 + $0x8] sm:$0xff]  ;;  %v125_v18 = vlaneseq }
  0x49   :  { %1566 = vmatprep.subr.bf16.mxu0 %v2037_v0  ;;  %1867 = vmatprep.subr.bf16.mxu1 %v2037_v0  ;;  %v259_v25 = vpack.c.bf16 %v256_v20, %v256_v20  ;;  %v254_v34 = vld [vmem:[#allocation2 + $0x11] sm:$0xff]  ;;  %v255_v35 = vld [vmem:[#allocation2 + $0x19] sm:$0xff]  ;;  %v420_v49 = vpack.c.bf16 %v413_v46, %v412_v45  ;;  %v403_v51 = vld [vmem:[#allocation2 + $0x2] sm:$0xff] }
  0x4a   :  { %v258_v40 = vpack.c.bf16 %v255_v35, %v254_v34  ;;  %v232_v47 = vld [vmem:[#allocation2] sm:$0xff]  ;;  %v404_v52 = vld [vmem:[#allocation2 + $0xa] sm:$0xff]  ;;  %v235_v56 = vld [vmem:[#allocation2 + $0x18] sm:$0xff]  ;;  %v2290_v19 = vshrl.u32 %v125_v18, 7 }
  0x4b   :  { %v237_v53 = vpack.c.bf16 %v233_v50, %v232_v47  ;;  %v408_v54 = vpack.c.bf16 %v404_v52, %v403_v51  ;;  %v234_v55 = vld [vmem:[#allocation2 + $0x10] sm:$0xff]  ;;  %v406_v58 = vld [vmem:[#allocation2 + $0x1a] sm:$0xff]  ;;  %v407_v62 = vld [vmem:[#allocation2 + $0x22] sm:$0x3] }
  0x4c   :  { %1567 = vmatpush3.bf16.msra.mxu0 %v269_v17  ;;  %1871 = vmatpush3.bf16.msra.mxu1 %v269_v17  ;;  %v405_v57 = vld [vmem:[#allocation2 + $0x12] sm:$0xff]  ;;  %v238_v59 = vpack.c.bf16 %v235_v56, %v234_v55  ;;  %v236_v61 = vld [vmem:[#allocation2 + $0x20] sm:$0x3]  ;;  %v410_v1 = vpack.c.bf16 %v407_v62, %v407_v62  ;;  %v2194_v2 = vld [vmem:[#allocation12 + $0x78] sm:$0xff]  ;;  %v127_v20 = vadd.s32 8, %v2290_v19  ;;  %v128_v21 = vadd.s32 16, %v2290_v19 }
  0x4d   :  { %1580 = vmatprep.subr.bf16.mxu1 %v2037_v0  ;;  %1600 = vmatprep.subr.bf16.mxu0 %v2037_v0  ;;  %v409_v60 = vpack.c.bf16 %v406_v58, %v405_v57  ;;  %v239_v63 = vpack.c.bf16 %v236_v61, %v236_v61  ;;  %v2199_v3 = vld [vmem:[#allocation12 + $0x70] sm:$0xff]  ;;  %v2205_v4 = vld [vmem:[#allocation12 + $0x68] sm:$0xff]  ;;  %v2211_v5 = vld [vmem:[#allocation12 + $0x60] sm:$0xff]  ;;  %v131_v22 = vadd.s32 1, %v2290_v19  ;;  %v130_v31 = vadd.s32 32, %v2290_v19 }
  0x4e   :  { %v2217_v6 = vld [vmem:[#allocation12 + $0x58] sm:$0xff]  ;;  %v2223_v7 = vld [vmem:[#allocation12 + $0x50] sm:$0xff]  ;;  %v2229_v8 = vld [vmem:[#allocation12 + $0x48] sm:$0xff]  ;;  %v132_v23 = vadd.s32 1, %v127_v20 }
  0x4f   :  { %1569 = vmatmul.mubr.msk.bf16.vlgmr.msra.gmra.mxu0 %vm118_vm2, %v257_v24  ;;  %1577 = vmatmul.mubr.msk.bf16.vlgmr.msra.gmra.mxu1 %vm118_vm2, %v259_v25  ;;  %v2235_v9 = vld [vmem:[#allocation12 + $0x40] sm:$0xff]  ;;  %v2241_v10 = vld [vmem:[#allocation12 + $0x38] sm:$0xff]  ;;  %v2247_v11 = vld [vmem:[#allocation12 + $0x30] sm:$0xff]  ;;  %v129_v24 = vadd.s32 24, %v2290_v19  ;;  %v133_v25 = vadd.s32 1, %v128_v21  ;;  %v135_v36 = vadd.s32 1, %v130_v31 }
  0x50   :  { %1581 = vmatpush3.bf16.msra.mxu1 %v251_v26  ;;  %1601 = vmatpush3.bf16.msra.mxu0 %v423_v27  ;;  %v2253_v12 = vld [vmem:[#allocation12 + $0x28] sm:$0xff]  ;;  %v2259_v13 = vld [vmem:[#allocation12 + $0x20] sm:$0xff]  ;;  %v2265_v14 = vld [vmem:[#allocation12 + $0x18] sm:$0xff]  ;;  %v2296_v26 = vmul.u32.u64.low 3817748708, %v131_v22  ;;  %v2297_v27 = vmul.u32.u64.high 3817748708, %v131_v22, %v2296_v26 }
  0x51   :  { %1582 = vmatprep.subr.bf16.mxu1 %v2037_v0  ;;  %1602 = vmatprep.subr.bf16.mxu0 %v2037_v0  ;;  %v2271_v15 = vld [vmem:[#allocation12 + $0x10] sm:$0xff]  ;;  %v2277_v16 = vld [vmem:[#allocation12 + $0x8] sm:$0xff]  ;;  %v2280_v17 = vld [vmem:[#allocation12] sm:$0xff]  ;;  %v2299_v28 = vmul.u32.u64.low 3817748708, %v132_v23  ;;  %v2300_v29 = vmul.u32.u64.high 3817748708, %v132_v23, %v2299_v28  ;;  %v134_v30 = vadd.s32 1, %v129_v24 }
  0x52   :  { %1572 = vmatprep.mubr.msk.bf16.mxu0 %vm2038_vm1, %v2037_v0  ;;  %1588 = vmatprep.mubr.msk.bf16.mxu1 %vm2038_vm1, %v2037_v0  ;;  %v2313_v43 = vmul.u32.u64.low 3817748708, %v135_v36  ;;  %v2314_v44 = vmul.u32.u64.high 3817748708, %v135_v36, %v2313_v43 }
  0x53   :  { %v2306_v34 = vmul.u32.u64.low 3817748708, %v134_v30  ;;  %v2307_v35 = vmul.u32.u64.high 3817748708, %v134_v30, %v2306_v34 }
  0x54   :  { %1583 = vmatpush3.bf16.msra.mxu1 %v250_v32  ;;  %1603 = vmatpush3.bf16.msra.mxu0 %v422_v33  ;;  %v2303_v32 = vmul.u32.u64.low 3817748708, %v133_v25  ;;  %v2304_v33 = vmul.u32.u64.high 3817748708, %v133_v25, %v2303_v32 }
  0x55   :  { %1584 = vmatprep.subr.bf16.mxu1 %v2037_v0  ;;  %1604 = vmatprep.subr.bf16.mxu0 %v2037_v0  ;;  %v175_v52 = vshrl.u32 %v2307_v35, 4 }
  0x56   :  { %v164_v47 = vshrl.u32 %v2304_v33, 4 }
  0x57   :  { %1573 = vmatmul.mubr.msk.bf16.gmra.mxu0 %vm118_vm2, %v258_v40  ;;  %v176_v58 = vmul.u32 18, %v175_v52 }
  0x58   :  { %1585 = vmatpush3.bf16.msra.mxu1 %v249_v41  ;;  %1605 = vmatpush3.bf16.msra.mxu0 %v421_v42  ;;  %v142_v41 = vshrl.u32 %v2297_v27, 4  ;;  %v153_v42 = vshrl.u32 %v2300_v29, 4 }
  0x59   :  { %1586 = vmatprep.subr.bf16.mxu1 %v2037_v0  ;;  %1606 = vmatprep.subr.bf16.mxu0 %v2037_v0 }
  0x5a   :  { %1608 = vmatprep.mubr.msk.bf16.mxu0 %vm2038_vm1, %v2037_v0  ;;  %v143_v50 = vmul.u32 18, %v142_v41  ;;  %v154_v51 = vmul.u32 18, %v153_v42 }
  0x5c   :  { %1587 = vmatpush3.bf16.msra.mxu1 %v248_v48  ;;  %1607 = vmatpush3.bf16.msra.mxu0 %v420_v49  ;;  %v144_v56 = vsub.s32 %v131_v22, %v143_v50  ;;  %v155_v57 = vsub.s32 %v132_v23, %v154_v51 }
  0x5d   :  { %1620 = vmatprep.subr.mxu1 %v2037_v0  ;;  %1655 = vmatprep.subr.mxu0 %v2037_v0 }
  0x5e   :  { %vm191_vm3 = vcmp.ne.s32.totalorder %v144_v56, 0  ;;  %vm196_vm4 = vcmp.lt.s32.totalorder %v144_v56, 0  ;;  %vm192_vm5 = vcmp.ne.s32.totalorder %v155_v57, 0  ;;  %vm197_vm6 = vcmp.lt.s32.totalorder %v155_v57, 0 }
  0x5f   :  { %1589 = vmatmul.mubr.msk.bf16.vlgmr.msra.gmra.mxu1 %vm118_vm2, %v237_v53  ;;  %1609 = vmatmul.mubr.msk.bf16.vlgmr.msra.gmra.mxu0 %vm118_vm2, %v408_v54  ;;  %v165_v54 = vmul.u32 18, %v164_v47  ;;  %vm201_vm9 = vmand %vm196_vm4, %vm191_vm3  ;;  %v206_v21 = vadd.s32 18, %v144_v56  ;;  %v207_v22 = vadd.s32 18, %v155_v57 }
  0x60   :  { %1592 = vmatprep.mubr.msk.bf16.mxu1 %vm2038_vm1, %v2037_v0  ;;  %1612 = vmatprep.mubr.msk.bf16.mxu0 %vm2038_vm1, %v2037_v0  ;;  %vm202_vm10 = vmand %vm197_vm6, %vm192_vm5 }
  0x61   :  { %1621 = vmatpush3.msra.mxu1 %v2194_v2  ;;  %1656 = vmatpush3.msra.mxu0 %v2194_v2  ;;  %v166_v61 = vsub.s32 %v133_v25, %v165_v54  ;;  %v212_v32 = vsel %vm202_vm10, %v207_v22, %v155_v57 }
  0x62   :  { %1622 = vmatprep.subr.mxu1 %v2037_v0  ;;  %1657 = vmatprep.subr.mxu0 %v2037_v0  ;;  %vm217_vm4 = vcmp.ge.s32.totalorder %v212_v32, 1  ;;  %vm222_vm5 = vcmp.le.s32.totalorder %v212_v32, 16 }
  0x63   :  { %1623 = vmatpush3.msra.mxu1 %v2199_v3  ;;  %1658 = vmatpush3.msra.mxu0 %v2199_v3  ;;  %vm193_vm7 = vcmp.ne.s32.totalorder %v166_v61, 0  ;;  %vm198_vm8 = vcmp.lt.s32.totalorder %v166_v61, 0  ;;  %v208_v26 = vadd.s32 18, %v166_v61  ;;  %vm2331_vm10 = vmand %vm217_vm4, %vm222_vm5  ;;  %vm525_vm5 = vcmask 1041408  }
  0x64   :  { %1624 = vmatprep.subr.mxu1 %v2037_v0  ;;  %1659 = vmatprep.subr.mxu0 %v2037_v0  ;;  %vm203_vm11 = vmand %vm198_vm8, %vm193_vm7 }
  0x65   :  { %1625 = vmatpush3.msra.mxu1 %v2205_v4  ;;  %1660 = vmatpush3.msra.mxu0 %v2205_v4 }
  0x66   :  { %1626 = vmatprep.subr.mxu1 %v2037_v0  ;;  %1661 = vmatprep.subr.mxu0 %v2037_v0 }
  0x67   :  { %1593 = vmatmul.mubr.msk.bf16.gmra.mxu1 %vm118_vm2, %v238_v59  ;;  %1613 = vmatmul.mubr.msk.bf16.gmra.mxu0 %vm118_vm2, %v409_v60  ;;  %v186_v59 = vshrl.u32 %v2314_v44, 4 }
  0x68   :  { %1596 = vmatprep.mubr.msk.bf16.mxu1 %vm2038_vm1, %v2037_v0  ;;  %1616 = vmatprep.mubr.msk.bf16.mxu0 %vm2038_vm1, %v2037_v0 }
  0x69   :  { %1627 = vmatpush3.msra.mxu1 %v2211_v5  ;;  %1662 = vmatpush3.msra.mxu0 %v2211_v5 }
  0x6a   :  { %1628 = vmatprep.subr.mxu1 %v2037_v0  ;;  %1663 = vmatprep.subr.mxu0 %v2037_v0 }
  0x6b   :  { %1629 = vmatpush3.msra.mxu1 %v2217_v6  ;;  %1664 = vmatpush3.msra.mxu0 %v2217_v6 }
  0x6c   :  { %1630 = vmatprep.subr.mxu1 %v2037_v0  ;;  %1665 = vmatprep.subr.mxu0 %v2037_v0 }
  0x6d   :  { %1631 = vmatpush3.msra.mxu1 %v2223_v7  ;;  %1666 = vmatpush3.msra.mxu0 %v2223_v7 }
  0x6e   :  { %1632 = vmatprep.subr.mxu1 %v2037_v0  ;;  %1667 = vmatprep.subr.mxu0 %v2037_v0 }
  0x6f   :  { %1597 = vmatmul.mubr.msk.bf16.gmra.mxu1 %vm118_vm2, %v239_v63  ;;  %1617 = vmatmul.mubr.msk.bf16.gmra.mxu0 %vm118_vm2, %v410_v1  ;;  %v177_v63 = vsub.s32 %v134_v30, %v176_v58  ;;  %v187_v1 = vmul.u32 18, %v186_v59  ;;  %v211_v30 = vsel %vm201_vm9, %v206_v21, %v144_v56 }
  0x70   :  { %1652 = vmatprep.mubr.msk.f32.mxu1 %vm2038_vm1, %v2037_v0  ;;  %1687 = vmatprep.mubr.msk.f32.mxu0 %vm2038_vm1, %v2037_v0  ;;  %vm216_vm3 = vcmp.ge.s32.totalorder %v211_v30, 1  ;;  %vm221_vm6 = vcmp.le.s32.totalorder %v211_v30, 16 }
  0x71   :  { %1633 = vmatpush3.msra.mxu1 %v2229_v8  ;;  %1668 = vmatpush3.msra.mxu0 %v2229_v8  ;;  %vm194_vm12 = vcmp.ne.s32.totalorder %v177_v63, 0  ;;  %vm199_vm13 = vcmp.lt.s32.totalorder %v177_v63, 0  ;;  %v188_v25 = vsub.s32 %v135_v36, %v187_v1  ;;  %v209_v33 = vadd.s32 18, %v177_v63 }
  0x72   :  { %1634 = vmatprep.subr.mxu1 %v2037_v0  ;;  %1669 = vmatprep.subr.mxu0 %v2037_v0  ;;  %vm204_vm14 = vmand %vm199_vm13, %vm194_vm12 }
  0x73   :  { %1635 = vmatpush3.msra.mxu1 %v2235_v9  ;;  %1670 = vmatpush3.msra.mxu0 %v2235_v9  ;;  %vm195_vm15 = vcmp.ne.s32.totalorder %v188_v25, 0  ;;  %vm200_vm0 = vcmp.lt.s32.totalorder %v188_v25, 0  ;;  %v214_v44 = vsel %vm204_vm14, %v209_v33, %v177_v63 }
  0x74   :  { %1636 = vmatprep.subr.mxu1 %v2037_v0  ;;  %1671 = vmatprep.subr.mxu0 %v2037_v0  ;;  %vm205_vm9 = vmand %vm200_vm0, %vm195_vm15  ;;  %vm219_vm12 = vcmp.ge.s32.totalorder %v214_v44, 1  ;;  %vm224_vm14 = vcmp.le.s32.totalorder %v214_v44, 16 }
  0x75   :  { %1637 = vmatpush3.msra.mxu1 %v2241_v10  ;;  %1672 = vmatpush3.msra.mxu0 %v2241_v10  ;;  %vm2356_vm15 = vmand %vm219_vm12, %vm224_vm14 }
  0x76   :  { %1638 = vmatprep.subr.mxu1 %v2037_v0  ;;  %1673 = vmatprep.subr.mxu0 %v2037_v0 }
  0x77   :  { %1639 = vmatpush3.msra.mxu1 %v2247_v11  ;;  %1674 = vmatpush3.msra.mxu0 %v2247_v11 }
  0x78   :  { %1640 = vmatprep.subr.mxu1 %v2037_v0  ;;  %1675 = vmatprep.subr.mxu0 %v2037_v0 }
  0x79   :  { %1641 = vmatpush3.msra.mxu1 %v2253_v12  ;;  %1676 = vmatpush3.msra.mxu0 %v2253_v12 }
  0x7a   :  { %1642 = vmatprep.subr.mxu1 %v2037_v0  ;;  %1677 = vmatprep.subr.mxu0 %v2037_v0 }
  0x7b   :  { %1643 = vmatpush3.msra.mxu1 %v2259_v13  ;;  %1678 = vmatpush3.msra.mxu0 %v2259_v13 }
  0x7c   :  { %1644 = vmatprep.subr.mxu1 %v2037_v0  ;;  %1679 = vmatprep.subr.mxu0 %v2037_v0 }
  0x7d   :  { %1645 = vmatpush3.msra.mxu1 %v2265_v14  ;;  %1680 = vmatpush3.msra.mxu0 %v2265_v14 }
  0x7e   :  { %1646 = vmatprep.subr.mxu1 %v2037_v0  ;;  %1681 = vmatprep.subr.mxu0 %v2037_v0 }
  0x7f   :  { %1647 = vmatpush3.msra.mxu1 %v2271_v15  ;;  %1682 = vmatpush3.msra.mxu0 %v2271_v15 }
  0x80   :  { %1648 = vmatprep.subr.mxu1 %v2037_v0  ;;  %1683 = vmatprep.subr.mxu0 %v2037_v0 }
  0x81   :  { %1649 = vmatpush3.msra.mxu1 %v2277_v16  ;;  %1684 = vmatpush3.msra.mxu0 %v2277_v16 }
  0x82   :  { %1650 = vmatprep.subr.mxu1 %v2037_v0  ;;  %1685 = vmatprep.subr.mxu0 %v2037_v0 }
  0x83   :  { %1651 = vmatpush3.msra.mxu1 %v2280_v17  ;;  %1686 = vmatpush3.msra.mxu0 %v2280_v17 }
  0x84   :  { %1690 = vmatprep.subr.bf16.mxu1 %v2037_v0  ;;  %1718 = vmatprep.subr.bf16.mxu0 %v2037_v0 }
 0x10f   :  { %v316_v37 = vpop.f32.mrf.mxu0  ;;  %v2309_v38 = vpop.f32.mrf.mxu1 }
 0x111   :  { %v1570_v39 = vpop.f32.mrf.mxu0  ;;  %v1578_v40 = vpop.f32.mrf.mxu1 }
 0x112   :  { %v213_v39 = vsel %vm203_vm11, %v208_v26, %v166_v61  ;;  %vm2336_vm11 = vmand %vm216_vm3, %vm221_vm6 }
 0x113   :  { %v319_v45 = vpop.f32.mrf.mxu0  ;;  %v335_v46 = vpop.f32.mrf.mxu1  ;;  %vm218_vm7 = vcmp.ge.s32.totalorder %v213_v39, 1  ;;  %vm223_vm8 = vcmp.le.s32.totalorder %v213_v39, 16  ;;  %vm1896_vm6 = vmpackc.low %vm2331_vm10, %vm2336_vm11 }
 0x114   :  { %vm2340_vm13 = vmand %vm218_vm7, %vm223_vm8 }
 0x115   :  { %v1571_v48 = vpop.f32.mrf.mxu0  ;;  %v1579_v49 = vpop.f32.mrf.mxu1  ;;  %vm1899_vm7 = vmpackc.low %vm2356_vm15, %vm2340_vm13 }
 0x117   :  { %v324_v53 = vpop.f32.mrf.mxu0 }
 0x119   :  { %v1574_v55 = vpop.f32.mrf.mxu0 }
 0x11b   :  { %v2319_v60 = vpop.f32.mrf.mxu0 }
 0x11d   :  { %v1575_v62 = vpop.f32.mrf.mxu0 }
 0x11f   :  { %v381_v18 = vpop.f32.mrf.mxu1  ;;  %v467_v20 = vpop.f32.mrf.mxu0 }
 0x120   :  { %v382_v27 = vadd.f32 %v381_v18, %v316_v37  ;;  %v1421_v37 = vld [vmem:[%s2589_s5] ss:$0 sm:$0xff] }
 0x121   :  { %v1590_v23 = vpop.f32.mrf.mxu1  ;;  %v1610_v24 = vpop.f32.mrf.mxu0 }
 0x122   :  { %v489_v40 = vadd.f32 %v467_v20, %v382_v27 }
 0x123   :  { %v384_v28 = vpop.f32.mrf.mxu1  ;;  %v470_v29 = vpop.f32.mrf.mxu0 }
 0x124   :  { %v385_v31 = vadd.f32 %v384_v28, %v319_v45  ;;  %v210_v45 = vadd.s32 18, %v188_v25  ;;  %v2328_v49 = vadd.f32 %v1421_v37, %v489_v40 }
 0x125   :  { %v1591_v34 = vpop.f32.mrf.mxu1  ;;  %v1611_v35 = vpop.f32.mrf.mxu0 }
 0x126   :  { %v490_v41 = vadd.f32 %v470_v29, %v385_v31  ;;  %v215_v58 = vsel %vm205_vm9, %v210_v45, %v188_v25  ;;  %v517_v63 = vsel %vm2336_vm11, %v2328_v49, 0.0 }
 0x127   :  { %v389_v36 = vpop.f32.mrf.mxu1  ;;  %v475_v42 = vpop.f32.mrf.mxu0  ;;  %vm220_vm0 = vcmp.ge.s32.totalorder %v215_v58, 1  ;;  %vm225_vm3 = vcmp.le.s32.totalorder %v215_v58, 16  ;;  %v534_v26 = vmul.f32 %v517_v63, %v517_v63 }
 0x128   :  { %v390_v43 = vadd.f32 %v389_v36, %v324_v53  ;;  %v2324_v46 = vadd.f32 %v1421_v37, %v490_v41  ;;  %vm2366_vm4 = vmand %vm220_vm0, %vm225_vm3 }
 0x129   :  { %v1594_v47 = vpop.f32.mrf.mxu1  ;;  %v1614_v48 = vpop.f32.mrf.mxu0 }
 0x12a   :  { %v491_v51 = vadd.f32 %v475_v42, %v390_v43  ;;  %v518_v59 = vsel %vm2331_vm10, %v2324_v46, 0.0 }
 0x12b   :  { %v392_v53 = vpop.f32.mrf.mxu1  ;;  %v478_v54 = vpop.f32.mrf.mxu0  ;;  %v535_v22 = vmul.f32 %v518_v59, %v518_v59  ;;  %v522_v28 = vadd.f32 %v518_v59, %v517_v63 }
 0x12c   :  { %v2344_v56 = vadd.f32 %v1421_v37, %v491_v51  ;;  %v393_v57 = vadd.f32 %v392_v53, %v2319_v60 }
 0x12d   :  { %v1595_v61 = vpop.f32.mrf.mxu1  ;;  %v1615_v62 = vpop.f32.mrf.mxu0  ;;  %v539_v35 = vadd.f32 %v535_v22, %v534_v26  ;;  %v825_v26 = vld [vmem:[#allocation9 + $0xf8] sm:$0xff] }
 0x12e   :  { %v492_v1 = vadd.f32 %v478_v54, %v393_v57  ;;  %v519_v18 = vsel %vm2340_vm13, %v2344_v56, 0.0 }
 0x12f   :  { %v397_v60 = vpop.f32.mrf.mxu1  ;;  %v483_v21 = vpop.f32.mrf.mxu0  ;;  %v536_v29 = vmul.f32 %v519_v18, %v519_v18 }
 0x130   :  { %v2360_v23 = vadd.f32 %v1421_v37, %v492_v1  ;;  %v398_v24 = vadd.f32 %v397_v60, %v2309_v38  ;;  %v523_v38 = vadd.f32 %v522_v28, %v519_v18  ;;  %v823_v28 = vld [vmem:[#allocation9 + $0xe8] sm:$0xff] }
 0x131   :  { %v1598_v27 = vpop.f32.mrf.mxu1  ;;  %v1618_v25 = vpop.f32.mrf.mxu0  ;;  %v540_v42 = vadd.f32 %v539_v35, %v536_v29 }
 0x132   :  { %v520_v30 = vsel %vm2356_vm15, %v2360_v23, 0.0  ;;  %v493_v31 = vadd.f32 %v483_v21, %v398_v24  ;;  %v824_v24 = vld [vmem:[#allocation9 + $0xf0] sm:$0xff]  ;;  %v822_v25 = vld [vmem:[#allocation9 + $0xe0] sm:$0xff] }
 0x133   :  { %v400_v33 = vpop.f32.mrf.mxu1  ;;  %v486_v34 = vpop.f32.mrf.mxu0  ;;  %v537_v39 = vmul.f32 %v520_v30, %v520_v30  ;;  %v524_v43 = vadd.f32 %v523_v38, %v520_v30  ;;  %v833_v27 = vpack.c.bf16 %v825_v26, %v824_v24  ;;  %v832_v29 = vpack.c.bf16 %v823_v28, %v822_v25  ;;  %v820_v30 = vld [vmem:[#allocation9 + $0xd0] sm:$0xff]  ;;  %v810_v24 = vld [vmem:[#allocation9 + $0x80] sm:$0xff]  ;;  %v811_v26 = vld [vmem:[#allocation9 + $0x88] sm:$0xff] }
 0x134   :  { %v2370_v40 = vadd.f32 %v1421_v37, %v493_v31  ;;  %v821_v31 = vld [vmem:[#allocation9 + $0xd8] sm:$0xff]  ;;  %v791_v33 = vld [vmem:[#allocation9 + $0x70] sm:$0xff]  ;;  %v782_v25 = vld [vmem:[#allocation9 + $0x28] sm:$0xff]  ;;  %v826_v28 = vpack.c.bf16 %v811_v26, %v810_v24 }
 0x135   :  { %v1599_v41 = vpop.f32.mrf.mxu1  ;;  %v1619_v36 = vpop.f32.mrf.mxu0  ;;  %v541_v48 = vadd.f32 %v540_v42, %v537_v39  ;;  %v792_v34 = vld [vmem:[#allocation9 + $0x78] sm:$0xff]  ;;  %v831_v35 = vpack.c.bf16 %v821_v31, %v820_v30  ;;  %v818_v39 = vld [vmem:[#allocation9 + $0xc0] sm:$0xff]  ;;  %v790_v42 = vld [vmem:[#allocation9 + $0x68] sm:$0xff] }
 0x136   :  { %v521_v44 = vsel %vm2366_vm4, %v2370_v40, 0.0  ;;  %v800_v38 = vpack.c.bf16 %v792_v34, %v791_v33  ;;  %v819_v41 = vld [vmem:[#allocation9 + $0xc8] sm:$0xff]  ;;  %v789_v36 = vld [vmem:[#allocation9 + $0x60] sm:$0xff]  ;;  %v779_v30 = vld [vmem:[#allocation9 + $0x10] sm:$0xff] }
 0x137   :  { %v526_v45 = vsel %vm525_vm5, %v521_v44, 0.0  ;;  %v538_v47 = vmul.f32 %v521_v44, %v521_v44  ;;  %v799_v44 = vpack.c.bf16 %v790_v42, %v789_v36  ;;  %v780_v31 = vld [vmem:[#allocation9 + $0x18] sm:$0xff]  ;;  %v777_v33 = vld [vmem:[#allocation9] sm:$0xff] }
 0x138   :  { %v527_v51 = vadd.f32 %v526_v45, %v524_v43  ;;  %v830_v43 = vpack.c.bf16 %v819_v41, %v818_v39  ;;  %v816_v45 = vld [vmem:[#allocation9 + $0xb0] sm:$0xff]  ;;  %v794_v34 = vpack.c.bf16 %v780_v31, %v779_v30 }
 0x139   :  { %v542_v53 = vsel %vm525_vm5, %v538_v47, 0.0  ;;  %v817_v47 = vld [vmem:[#allocation9 + $0xb8] sm:$0xff] }
 0x13a   :  { %v528_v54 = vrot.slane %v527_v51, 4  ;;  %v543_v57 = vadd.f32 %v542_v53, %v541_v48  ;;  %v787_v48 = vld [vmem:[#allocation9 + $0x50] sm:$0xff]  ;;  %v829_v53 = vpack.c.bf16 %v817_v47, %v816_v45 }
 0x13c   :  { %v529_v58 = vadd.f32 %v528_v54, %v527_v51  ;;  %v544_v37 = vrot.slane %v543_v57, 4  ;;  %v788_v51 = vld [vmem:[#allocation9 + $0x58] sm:$0xff] }
 0x13d   :  { %v798_v54 = vpack.c.bf16 %v788_v51, %v787_v48  ;;  %v2398_v48 = vsub.s32 0, %v2290_v19  ;;  %v1422_v19 = vld [vmem:[%s2590_s6] ss:$0 sm:$0xff] }
 0x13e   :  { %v530_v59 = vrot.slane %v529_v58, 2  ;;  %v545_v61 = vadd.f32 %v544_v37, %v543_v57  ;;  %v814_v57 = vld [vmem:[#allocation9 + $0xa0] sm:$0xff] }
 0x13f   :  { %v785_v37 = vld [vmem:[#allocation9 + $0x40] sm:$0xff] }
 0x140   :  { %v531_v62 = vadd.f32 %v530_v59, %v529_v58  ;;  %v546_v63 = vrot.slane %v545_v61, 2  ;;  %v815_v58 = vld [vmem:[#allocation9 + $0xa8] sm:$0xff] }
 0x141   :  { %v786_v59 = vld [vmem:[#allocation9 + $0x48] sm:$0xff] }
 0x142   :  { %v532_v1 = vrot.slane %v531_v62, 1  ;;  %v547_v18 = vadd.f32 %v546_v63, %v545_v61  ;;  %v828_v61 = vpack.c.bf16 %v815_v58, %v814_v57  ;;  %v812_v63 = vld [vmem:[#allocation9 + $0x90] sm:$0xff] }
 0x144   :  { %v533_v60 = vadd.f32 %v532_v1, %v531_v62  ;;  %v548_v21 = vrot.slane %v547_v18, 1  ;;  %v797_v62 = vpack.c.bf16 %v786_v59, %v785_v37  ;;  %v813_v1 = vld [vmem:[#allocation9 + $0x98] sm:$0xff] }
 0x146   :  { %1653 = vmatmul.mubr.f32.vlgmr.msra.gmra.mxu1 %v533_v60  ;;  %v549_v22 = vadd.f32 %v548_v21, %v547_v18  ;;  %v783_v18 = vld [vmem:[#allocation9 + $0x30] sm:$0xff]  ;;  %v784_v60 = vld [vmem:[#allocation9 + $0x38] sm:$0xff]  ;;  %v827_v21 = vpack.c.bf16 %v813_v1, %v812_v63 }
 0x147   :  { %1706 = vmatprep.mubr.msk.bf16.mxu1 %vm2038_vm1, %v2037_v0  ;;  %1691 = vmatpush3.bf16.msra.mxu1 %v833_v27  ;;  %v781_v27 = vld [vmem:[#allocation9 + $0x20] sm:$0xff] }
 0x148   :  { %1688 = vmatmul.mubr.f32.vlgmr.msra.gmra.mxu0 %v549_v22  ;;  %1692 = vmatprep.subr.bf16.mxu1 %v2037_v0  ;;  %v796_v22 = vpack.c.bf16 %v784_v60, %v783_v18 }
 0x149   :  { %1734 = vmatprep.mubr.msk.bf16.mxu0 %vm2038_vm1, %v2037_v0  ;;  %1719 = vmatpush3.bf16.msra.mxu0 %v800_v38 }
 0x14a   :  { %1720 = vmatprep.subr.bf16.mxu0 %v2037_v0 }
 0x14b   :  { %1693 = vmatpush3.bf16.msra.mxu1 %v832_v29  ;;  %v795_v29 = vpack.c.bf16 %v782_v25, %v781_v27  ;;  %v969_v25 = vld [vmem:[#allocation9 + $0x170] sm:$0xff] }
 0x14c   :  { %1694 = vmatprep.subr.bf16.mxu1 %v2037_v0 }
 0x14d   :  { %1721 = vmatpush3.bf16.msra.mxu0 %v799_v44 }
 0x14e   :  { %1722 = vmatprep.subr.bf16.mxu0 %v2037_v0 }
 0x14f   :  { %1695 = vmatpush3.bf16.msra.mxu1 %v831_v35  ;;  %v778_v35 = vld [vmem:[#allocation9 + $0x8] sm:$0xff] }
 0x150   :  { %1696 = vmatprep.subr.bf16.mxu1 %v2037_v0  ;;  %v793_v38 = vpack.c.bf16 %v778_v35, %v777_v33 }
 0x151   :  { %1723 = vmatpush3.bf16.msra.mxu0 %v798_v54 }
 0x152   :  { %1724 = vmatprep.subr.bf16.mxu0 %v2037_v0 }
 0x153   :  { %1697 = vmatpush3.bf16.msra.mxu1 %v830_v43 }
 0x154   :  { %1698 = vmatprep.subr.bf16.mxu1 %v2037_v0 }
 0x155   :  { %1725 = vmatpush3.bf16.msra.mxu0 %v797_v62 }
 0x156   :  { %1726 = vmatprep.subr.bf16.mxu0 %v2037_v0 }
 0x157   :  { %1699 = vmatpush3.bf16.msra.mxu1 %v829_v53 }
 0x158   :  { %1700 = vmatprep.subr.bf16.mxu1 %v2037_v0 }
 0x159   :  { %1727 = vmatpush3.bf16.msra.mxu0 %v796_v22 }
 0x15a   :  { %1728 = vmatprep.subr.bf16.mxu0 %v2037_v0 }
 0x15b   :  { %1701 = vmatpush3.bf16.msra.mxu1 %v828_v61 }
 0x15c   :  { %1702 = vmatprep.subr.bf16.mxu1 %v2037_v0 }
 0x15d   :  { %1729 = vmatpush3.bf16.msra.mxu0 %v795_v29 }
 0x15e   :  { %1730 = vmatprep.subr.bf16.mxu0 %v2037_v0 }
 0x15f   :  { %1703 = vmatpush3.bf16.msra.mxu1 %v827_v21 }
 0x160   :  { %1704 = vmatprep.subr.bf16.mxu1 %v2037_v0 }
 0x161   :  { %1731 = vmatpush3.bf16.msra.mxu0 %v794_v34 }
 0x162   :  { %1732 = vmatprep.subr.bf16.mxu0 %v2037_v0 }
 0x163   :  { %1705 = vmatpush3.bf16.msra.mxu1 %v826_v28  ;;  %v970_v28 = vld [vmem:[#allocation9 + $0x178] sm:$0xff] }
 0x164   :  { %1746 = vmatprep.subr.bf16.mxu1 %v2037_v0 }
 0x165   :  { %1733 = vmatpush3.bf16.msra.mxu0 %v793_v38  ;;  %v978_v38 = vpack.c.bf16 %v970_v28, %v969_v25 }
 0x166   :  { %1774 = vmatprep.subr.mxu0 %v2037_v0 }
 0x206   :  { %v632_v39 = vpop.f32.mrf.mxu1 }
 0x207   :  { %v706_v41 = vmul.f32 %v632_v39, %v632_v39  ;;  %v712_v51 = vrot.slane %v632_v39, %v2398_v48 }
 0x208   :  { %v1654_v36 = vpop.f32.mrf.mxu1  ;;  %v702_v42 = vpop.f32.mrf.mxu0 }
 0x209   :  { %v707_v43 = vsub.f32 %v702_v42, %v706_v41  ;;  %v713_v54 = vsub.f32 %v2328_v49, %v712_v51  ;;  %v714_v57 = vsub.f32 %v2324_v46, %v712_v51  ;;  %v715_v58 = vsub.f32 %v2344_v56, %v712_v51  ;;  %v1423_v46 = vld [vmem:[%s2591_s7] ss:$0 sm:$0xff] }
 0x20a   :  { %v1689_v44 = vpop.f32.mrf.mxu0  ;;  %v716_v37 = vsub.f32 %v2360_v23, %v712_v51  ;;  %v717_v61 = vsub.f32 %v2370_v40, %v712_v51 }
 0x20b   :  { %v708_v45 = vmax.f32 %v707_v43, 0.0  ;;  %v967_v44 = vld [vmem:[#allocation9 + $0x160] sm:$0xff] }
 0x20d   :  { %v718_v47 = vadd.f32 1e-05, %v708_v45  ;;  %v968_v45 = vld [vmem:[#allocation9 + $0x168] sm:$0xff] }
 0x20e   :  { %v977_v51 = vpack.c.bf16 %v968_v45, %v967_v44 }
 0x20f   :  { %1892 = vrsqrt.f32 %v718_v47 }
 0x21c   :  { %v1893_v53 = vpop.eup %1892 }
 0x21d   :  { %v723_v59 = vrot.slane %v1893_v53, %v2398_v48  ;;  %v965_v53 = vld [vmem:[#allocation9 + $0x150] sm:$0xff] }
 0x21f   :  { %v724_v62 = vmul.f32 %v723_v59, %v713_v54  ;;  %v725_v63 = vmul.f32 %v723_v59, %v714_v57  ;;  %v726_v1 = vmul.f32 %v723_v59, %v715_v58  ;;  %v727_v18 = vmul.f32 %v723_v59, %v716_v37  ;;  %v966_v54 = vld [vmem:[#allocation9 + $0x158] sm:$0xff] }
 0x220   :  { %v728_v49 = vmul.f32 %v723_v59, %v717_v61  ;;  %v976_v37 = vpack.c.bf16 %v966_v54, %v965_v53  ;;  %v963_v61 = vld [vmem:[#allocation9 + $0x140] sm:$0xff] }
 0x221   :  { %v735_v56 = vmul.f32 %v1422_v19, %v724_v62  ;;  %v736_v60 = vmul.f32 %v1422_v19, %v725_v63  ;;  %v737_v23 = vmul.f32 %v1422_v19, %v726_v1  ;;  %v738_v21 = vmul.f32 %v1422_v19, %v727_v18  ;;  %v961_v1 = vld [vmem:[#allocation9 + $0x130] sm:$0xff]  ;;  %v962_v18 = vld [vmem:[#allocation9 + $0x138] sm:$0xff] }
 0x222   :  { %v739_v22 = vmul.f32 %v1422_v19, %v728_v49  ;;  %v964_v19 = vld [vmem:[#allocation9 + $0x148] sm:$0xff] }
 0x223   :  { %v746_v24 = vadd.f32 %v1423_v46, %v735_v56  ;;  %v747_v40 = vadd.f32 %v1423_v46, %v736_v60  ;;  %v748_v26 = vadd.f32 %v1423_v46, %v737_v23  ;;  %v749_v27 = vadd.f32 %v1423_v46, %v738_v21 }
 0x224   :  { %v750_v29 = vadd.f32 %v1423_v46, %v739_v22  ;;  %v975_v63 = vpack.c.bf16 %v964_v19, %v963_v61  ;;  %v974_v60 = vpack.c.bf16 %v962_v18, %v961_v1  ;;  %v959_v22 = vld [vmem:[#allocation9 + $0x120] sm:$0xff]  ;;  %v1424_v18 = vld [vmem:[%s2592_s8] ss:$0 sm:$0xff] }
 0x225   :  { %v751_v30 = vmax.f32 %v746_v24, 0.0  ;;  %v752_v31 = vmax.f32 %v747_v40, 0.0  ;;  %v753_v33 = vmax.f32 %v748_v26, 0.0  ;;  %v754_v34 = vmax.f32 %v749_v27, 0.0  ;;  %v960_v24 = vld [vmem:[#allocation9 + $0x128] sm:$0xff]  ;;  %v957_v26 = vld [vmem:[#allocation9 + $0x110] sm:$0xff] }
 0x226   :  { %v755_v35 = vmax.f32 %v750_v29, 0.0  ;;  %v973_v40 = vpack.c.bf16 %v960_v24, %v959_v22  ;;  %v958_v27 = vld [vmem:[#allocation9 + $0x118] sm:$0xff] }
 0x227   :  { %v756_v39 = vsel %vm2336_vm11, %v751_v30, 0.0  ;;  %v757_v41 = vsel %vm2331_vm10, %v752_v31, 0.0  ;;  %v758_v36 = vsel %vm2340_vm13, %v753_v33, 0.0  ;;  %v759_v42 = vsel %vm2356_vm15, %v754_v34, 0.0 }
 0x228   :  { %v760_v43 = vsel %vm2366_vm4, %v755_v35, 0.0  ;;  %763 = vst [vmem:[#allocation3 + $0x1] sm:$0xff] %v756_v39  ;;  %764 = vst [vmem:[#allocation3 + $0x9] sm:$0xff] %v757_v41  ;;  %v1897_v47 = vpack.c.bf16 %v752_v31, %v751_v30  ;;  %v1900_v62 = vpack.c.bf16 %v754_v34, %v753_v33  ;;  %v972_v28 = vpack.c.bf16 %v958_v27, %v957_v26  ;;  %v955_v30 = vld [vmem:[#allocation9 + $0x100] sm:$0xff]  ;;  %v956_v31 = vld [vmem:[#allocation9 + $0x108] sm:$0xff] }
 0x229   :  { %765 = vst [vmem:[#allocation3 + $0x11] sm:$0xff] %v758_v36  ;;  %766 = vst [vmem:[#allocation3 + $0x19] sm:$0xff] %v759_v42  ;;  %v971_v33 = vpack.c.bf16 %v956_v31, %v955_v30 }
 0x22a   :  { %767 = vst [vmem:[#allocation3 + $0x21] sm:$0x3] %v760_v43  ;;  %1898 = vmatmul.mubr.msk.bf16.vlgmr.msra.gmra.mxu1 %vm1896_vm6, %v1897_v47 }
 0x22b   :  { %1747 = vmatpush3.bf16.msra.mxu1 %v978_v38  ;;  %1710 = vmatprep.mubr.msk.bf16.mxu1 %vm2038_vm1, %v2037_v0 }
 0x22c   :  { %1748 = vmatprep.subr.bf16.mxu1 %v2037_v0 }
 0x22f   :  { %v769_v57 = vld [vmem:[#allocation3] sm:$0xff]  ;;  %v770_v58 = vld [vmem:[#allocation3 + $0x8] sm:$0xff]  ;;  %1749 = vmatpush3.bf16.msra.mxu1 %v977_v51 }
 0x230   :  { %v774_v59 = vpack.c.bf16 %v770_v58, %v769_v57  ;;  %1750 = vmatprep.subr.bf16.mxu1 %v2037_v0  ;;  %v771_v46 = vld [vmem:[#allocation3 + $0x10] sm:$0xff]  ;;  %v772_v49 = vld [vmem:[#allocation3 + $0x18] sm:$0xff]  ;;  %v946_v34 = vld [vmem:[#allocation3 + $0x2] sm:$0xff] }
 0x231   :  { %v805_v56 = vld [vmem:[#allocation3 + $0x21] sm:$0x3]  ;;  %v775_v23 = vpack.c.bf16 %v772_v49, %v771_v46  ;;  %v947_v35 = vld [vmem:[#allocation3 + $0xa] sm:$0xff]  ;;  %v948_v39 = vld [vmem:[#allocation3 + $0x12] sm:$0xff] }
 0x232   :  { %1735 = vmatmul.mubr.bf16.vlgmr.msra.gmra.mxu0 %v774_v59  ;;  %1901 = vmatmul.mubr.msk.bf16.gmra.mxu1 %vm1899_vm7, %v1900_v62  ;;  %v808_v21 = vpack.c.bf16 %v805_v56, %v805_v56  ;;  %v773_v25 = vld [vmem:[#allocation3 + $0x20] sm:$0x3]  ;;  %v951_v38 = vpack.c.bf16 %v947_v35, %v946_v34 }
 0x233   :  { %1738 = vmatprep.mubr.msk.bf16.mxu0 %vm2038_vm1, %v2037_v0  ;;  %1751 = vmatpush3.bf16.msra.mxu1 %v976_v37  ;;  %v776_v29 = vpack.c.bf16 %v773_v25, %v773_v25  ;;  %v949_v41 = vld [vmem:[#allocation3 + $0x1a] sm:$0xff] }
 0x234   :  { %1752 = vmatprep.subr.bf16.mxu1 %v2037_v0  ;;  %1714 = vmatprep.mubr.msk.bf16.mxu1 %vm2038_vm1, %v2037_v0  ;;  %v952_v36 = vpack.c.bf16 %v949_v41, %v948_v39 }
 0x235   :  { %1775 = vmatpush3.msra.mxu0 %v2194_v2 }
 0x236   :  { %1776 = vmatprep.subr.mxu0 %v2037_v0 }
 0x237   :  { %1753 = vmatpush3.bf16.msra.mxu1 %v975_v63  ;;  %1777 = vmatpush3.msra.mxu0 %v2199_v3 }
 0x238   :  { %1754 = vmatprep.subr.bf16.mxu1 %v2037_v0  ;;  %1778 = vmatprep.subr.mxu0 %v2037_v0 }
 0x239   :  { %1779 = vmatpush3.msra.mxu0 %v2205_v4 }
 0x23a   :  { %1739 = vmatmul.mubr.bf16.gmra.mxu0 %v775_v23  ;;  %1715 = vmatmul.mubr.bf16.gmra.mxu1 %v808_v21 }
 0x23b   :  { %1742 = vmatprep.mubr.msk.bf16.mxu0 %vm2038_vm1, %v2037_v0  ;;  %1755 = vmatpush3.bf16.msra.mxu1 %v974_v60 }
 0x23c   :  { %1756 = vmatprep.subr.bf16.mxu1 %v2037_v0  ;;  %1762 = vmatprep.mubr.msk.bf16.mxu1 %vm2038_vm1, %v2037_v0 }
 0x23d   :  { %1780 = vmatprep.subr.mxu0 %v2037_v0 }
 0x23e   :  { %1781 = vmatpush3.msra.mxu0 %v2211_v5 }
 0x23f   :  { %1757 = vmatpush3.bf16.msra.mxu1 %v973_v40  ;;  %1782 = vmatprep.subr.mxu0 %v2037_v0 }
 0x240   :  { %1758 = vmatprep.subr.bf16.mxu1 %v2037_v0  ;;  %1783 = vmatpush3.msra.mxu0 %v2217_v6 }
 0x241   :  { %1784 = vmatprep.subr.mxu0 %v2037_v0 }
 0x242   :  { %1743 = vmatmul.mubr.bf16.gmra.mxu0 %v776_v29 }
 0x243   :  { %1759 = vmatpush3.bf16.msra.mxu1 %v972_v28  ;;  %1785 = vmatpush3.msra.mxu0 %v2223_v7 }
 0x244   :  { %1760 = vmatprep.subr.bf16.mxu1 %v2037_v0  ;;  %1786 = vmatprep.subr.mxu0 %v2037_v0 }
 0x245   :  { %1787 = vmatpush3.msra.mxu0 %v2229_v8  ;;  %1806 = vmatprep.mubr.msk.f32.mxu0 %vm2038_vm1, %v2037_v0 }
 0x246   :  { %1788 = vmatprep.subr.mxu0 %v2037_v0 }
 0x247   :  { %1761 = vmatpush3.bf16.msra.mxu1 %v971_v33  ;;  %1789 = vmatpush3.msra.mxu0 %v2235_v9 }
 0x248   :  { %1809 = vmatprep.subr.mxu1 %v2037_v0  ;;  %1790 = vmatprep.subr.mxu0 %v2037_v0 }
 0x249   :  { %1791 = vmatpush3.msra.mxu0 %v2241_v10 }
 0x24a   :  { %1763 = vmatmul.mubr.bf16.vlgmr.msra.gmra.mxu1 %v951_v38  ;;  %1792 = vmatprep.subr.mxu0 %v2037_v0 }
 0x24b   :  { %1766 = vmatprep.mubr.msk.bf16.mxu1 %vm2038_vm1, %v2037_v0  ;;  %1810 = vmatpush3.msra.mxu1 %v2194_v2  ;;  %v950_v2 = vld [vmem:[#allocation3 + $0x22] sm:$0x3] }
 0x24c   :  { %1811 = vmatprep.subr.mxu1 %v2037_v0  ;;  %1793 = vmatpush3.msra.mxu0 %v2247_v11 }
 0x24d   :  { %1812 = vmatpush3.msra.mxu1 %v2199_v3  ;;  %1794 = vmatprep.subr.mxu0 %v2037_v0  ;;  %v953_v3 = vpack.c.bf16 %v950_v2, %v950_v2 }
 0x24e   :  { %1813 = vmatprep.subr.mxu1 %v2037_v0  ;;  %1795 = vmatpush3.msra.mxu0 %v2253_v12 }
 0x24f   :  { %1814 = vmatpush3.msra.mxu1 %v2205_v4  ;;  %1796 = vmatprep.subr.mxu0 %v2037_v0 }
 0x250   :  { %1815 = vmatprep.subr.mxu1 %v2037_v0  ;;  %1797 = vmatpush3.msra.mxu0 %v2259_v13 }
 0x251   :  { %1816 = vmatpush3.msra.mxu1 %v2211_v5  ;;  %1798 = vmatprep.subr.mxu0 %v2037_v0 }
 0x252   :  { %1767 = vmatmul.mubr.bf16.gmra.mxu1 %v952_v36  ;;  %1817 = vmatprep.subr.mxu1 %v2037_v0 }
 0x253   :  { %1770 = vmatprep.mubr.msk.bf16.mxu1 %vm2038_vm1, %v2037_v0  ;;  %1818 = vmatpush3.msra.mxu1 %v2217_v6 }
 0x254   :  { %1819 = vmatprep.subr.mxu1 %v2037_v0  ;;  %1799 = vmatpush3.msra.mxu0 %v2265_v14 }
 0x255   :  { %1820 = vmatpush3.msra.mxu1 %v2223_v7  ;;  %1800 = vmatprep.subr.mxu0 %v2037_v0 }
 0x256   :  { %1821 = vmatprep.subr.mxu1 %v2037_v0  ;;  %1801 = vmatpush3.msra.mxu0 %v2271_v15 }
 0x257   :  { %1822 = vmatpush3.msra.mxu1 %v2229_v8  ;;  %1802 = vmatprep.subr.mxu0 %v2037_v0 }
 0x258   :  { %1823 = vmatprep.subr.mxu1 %v2037_v0  ;;  %1803 = vmatpush3.msra.mxu0 %v2277_v16 }
 0x259   :  { %1824 = vmatpush3.msra.mxu1 %v2235_v9  ;;  %1804 = vmatprep.subr.mxu0 %v2037_v0 }
 0x25a   :  { %1771 = vmatmul.mubr.bf16.gmra.mxu1 %v953_v3  ;;  %1825 = vmatprep.subr.mxu1 %v2037_v0 }
 0x25b   :  { %1826 = vmatpush3.msra.mxu1 %v2241_v10  ;;  %1805 = vmatpush3.msra.mxu0 %v2280_v17 }
 0x25c   :  { %1827 = vmatprep.subr.mxu1 %v2037_v0  ;;  %1844 = vmatprep.subr.bf16.mxu0 %v2037_v0 }
 0x25d   :  { %1828 = vmatpush3.msra.mxu1 %v2247_v11  ;;  %1841 = vmatprep.mubr.msk.f32.mxu1 %vm2038_vm1, %v2037_v0 }
 0x25e   :  { %1829 = vmatprep.subr.mxu1 %v2037_v0 }
 0x25f   :  { %1830 = vmatpush3.msra.mxu1 %v2253_v12 }
 0x260   :  { %1831 = vmatprep.subr.mxu1 %v2037_v0 }
 0x261   :  { %1832 = vmatpush3.msra.mxu1 %v2259_v13 }
 0x262   :  { %1833 = vmatprep.subr.mxu1 %v2037_v0 }
 0x263   :  { %1834 = vmatpush3.msra.mxu1 %v2265_v14 }
 0x264   :  { %1835 = vmatprep.subr.mxu1 %v2037_v0 }
 0x265   :  { %1836 = vmatpush3.msra.mxu1 %v2271_v15 }
 0x266   :  { %1837 = vmatprep.subr.mxu1 %v2037_v0 }
 0x267   :  { %1838 = vmatpush3.msra.mxu1 %v2277_v16 }
 0x268   :  { %1839 = vmatprep.subr.mxu1 %v2037_v0 }
 0x269   :  { %1840 = vmatpush3.msra.mxu1 %v2280_v17 }
 0x2ea   :  { %v868_v4 = vpop.f32.mrf.mxu1 }
 0x2ec   :  { %v1708_v5 = vpop.f32.mrf.mxu1 }
 0x2ee   :  { %v871_v6 = vpop.f32.mrf.mxu1 }
 0x2f0   :  { %v1709_v7 = vpop.f32.mrf.mxu1 }
 0x2f2   :  { %v924_v8 = vpop.f32.mrf.mxu0  ;;  %v876_v9 = vpop.f32.mrf.mxu1 }
 0x2f3   :  { %v925_v61 = vadd.f32 %v924_v8, %v868_v4 }
 0x2f4   :  { %v1736_v10 = vpop.f32.mrf.mxu0  ;;  %v1712_v11 = vpop.f32.mrf.mxu1 }
 0x2f6   :  { %v927_v12 = vpop.f32.mrf.mxu0  ;;  %v879_v13 = vpop.f32.mrf.mxu1 }
 0x2f7   :  { %v928_v19 = vadd.f32 %v927_v12, %v871_v6 }
 0x2f8   :  { %v1737_v14 = vpop.f32.mrf.mxu0  ;;  %v1713_v15 = vpop.f32.mrf.mxu1 }
 0x2fa   :  { %v932_v42 = vpop.f32.mrf.mxu0  ;;  %v884_v43 = vpop.f32.mrf.mxu1 }
 0x2fb   :  { %v933_v49 = vadd.f32 %v932_v42, %v876_v9 }
 0x2fc   :  { %v1740_v44 = vpop.f32.mrf.mxu0  ;;  %v1716_v16 = vpop.f32.mrf.mxu1 }
 0x2fe   :  { %v935_v45 = vpop.f32.mrf.mxu0  ;;  %v887_v47 = vpop.f32.mrf.mxu1 }
 0x2ff   :  { %v936_v24 = vadd.f32 %v935_v45, %v879_v13 }
 0x300   :  { %v1741_v51 = vpop.f32.mrf.mxu0  ;;  %v1717_v17 = vpop.f32.mrf.mxu1 }
 0x301   :  { %v1300_v51 = vld [vmem:[#allocation10 + $0x30] sm:$0xff]  ;;  %v1301_v17 = vld [vmem:[#allocation10 + $0x38] sm:$0xff] }
 0x302   :  { %v940_v53 = vpop.f32.mrf.mxu0 }
 0x303   :  { %v941_v31 = vadd.f32 %v940_v53, %v884_v43 }
 0x304   :  { %v1744_v54 = vpop.f32.mrf.mxu0 }
 0x305   :  { %v1305_v54 = vpack.c.bf16 %v1301_v17, %v1300_v51 }
 0x306   :  { %v943_v57 = vpop.f32.mrf.mxu0 }
 0x308   :  { %v1745_v58 = vpop.f32.mrf.mxu0 }
 0x30a   :  { %v1013_v37 = vpop.f32.mrf.mxu1 }
 0x30b   :  { %v1035_v63 = vadd.f32 %v1013_v37, %v925_v61  ;;  %v1298_v37 = vld [vmem:[#allocation10 + $0x20] sm:$0xff] }
 0x30c   :  { %v1764_v59 = vpop.f32.mrf.mxu1 }
 0x30d   :  { %v2525_v23 = vadd.f32 %v1424_v18, %v1035_v63  ;;  %v1299_v59 = vld [vmem:[#allocation10 + $0x28] sm:$0xff]  ;;  %v1297_v63 = vld [vmem:[#allocation10 + $0x18] sm:$0xff] }
 0x30e   :  { %v1016_v62 = vpop.f32.mrf.mxu1 }
 0x30f   :  { %v1036_v1 = vadd.f32 %v1016_v62, %v928_v19  ;;  %v1053_v25 = vsel %vm2336_vm11, %v2525_v23, 0.0  ;;  %v1304_v19 = vpack.c.bf16 %v1299_v59, %v1298_v37  ;;  %v1296_v62 = vld [vmem:[#allocation10 + $0x10] sm:$0xff] }
 0x310   :  { %v1765_v46 = vpop.f32.mrf.mxu1  ;;  %v1069_v35 = vmul.f32 %v1053_v25, %v1053_v25 }
 0x311   :  { %v2523_v56 = vadd.f32 %v1424_v18, %v1036_v1  ;;  %v1303_v1 = vpack.c.bf16 %v1297_v63, %v1296_v62  ;;  %v1295_v46 = vld [vmem:[#allocation10 + $0x8] sm:$0xff] }
 0x312   :  { %v1021_v60 = vpop.f32.mrf.mxu1 }
 0x313   :  { %v1037_v21 = vadd.f32 %v1021_v60, %v933_v49  ;;  %v1054_v26 = vsel %vm2331_vm10, %v2523_v56, 0.0  ;;  %v1286_v60 = vld [vmem:[#allocation2 + $0x1] sm:$0xff] }
 0x314   :  { %v1768_v22 = vpop.f32.mrf.mxu1  ;;  %v1070_v33 = vmul.f32 %v1054_v26, %v1054_v26  ;;  %v1058_v39 = vadd.f32 %v1054_v26, %v1053_v25  ;;  %v1289_v26 = vld [vmem:[#allocation2 + $0x19] sm:$0xff]  ;;  %v1290_v25 = vld [vmem:[#allocation2 + $0x21] sm:$0x3] }
 0x315   :  { %v2527_v40 = vadd.f32 %v1424_v18, %v1037_v21  ;;  %v1287_v21 = vld [vmem:[#allocation2 + $0x9] sm:$0xff] }
 0x316   :  { %v1024_v27 = vpop.f32.mrf.mxu1  ;;  %v1074_v2 = vadd.f32 %v1070_v33, %v1069_v35  ;;  %v1291_v22 = vpack.c.bf16 %v1287_v21, %v1286_v60 }
 0x317   :  { %v1038_v28 = vadd.f32 %v1024_v27, %v936_v24  ;;  %v1055_v29 = vsel %vm2340_vm13, %v2527_v40, 0.0  ;;  %v1288_v24 = vld [vmem:[#allocation2 + $0x11] sm:$0xff] }
 0x318   :  { %v1769_v30 = vpop.f32.mrf.mxu1  ;;  %v1071_v50 = vmul.f32 %v1055_v29, %v1055_v29  ;;  %v1059_v3 = vadd.f32 %v1058_v39, %v1055_v29  ;;  %v1292_v27 = vpack.c.bf16 %v1289_v26, %v1288_v24 }
 0x319   :  { %v2538_v34 = vadd.f32 %v1424_v18, %v1038_v28  ;;  %v1293_v28 = vpack.c.bf16 %v1290_v25, %v1290_v25 }
 0x31a   :  { %v1029_v38 = vpop.f32.mrf.mxu1  ;;  %v1075_v6 = vadd.f32 %v1074_v2, %v1071_v50 }
 0x31b   :  { %v1056_v41 = vsel %vm2356_vm15, %v2538_v34, 0.0  ;;  %v1039_v52 = vadd.f32 %v1029_v38, %v941_v31 }
 0x31c   :  { %v1772_v36 = vpop.f32.mrf.mxu1  ;;  %v1072_v4 = vmul.f32 %v1056_v41, %v1056_v41  ;;  %v1060_v7 = vadd.f32 %v1059_v3, %v1056_v41 }
 0x31d   :  { %v2543_v55 = vadd.f32 %v1424_v18, %v1039_v52  ;;  %v1294_v18 = vld [vmem:[#allocation10] sm:$0xff] }
 0x31e   :  { %v1032_v5 = vpop.f32.mrf.mxu1  ;;  %v1076_v20 = vadd.f32 %v1075_v6, %v1072_v4  ;;  %v1302_v49 = vpack.c.bf16 %v1295_v46, %v1294_v18 }
 0x31f   :  { %v1057_v8 = vsel %vm2366_vm4, %v2543_v55, 0.0 }
 0x320   :  { %v1061_v9 = vsel %vm525_vm5, %v1057_v8, 0.0  ;;  %v1073_v10 = vmul.f32 %v1057_v8, %v1057_v8  ;;  %v1773_v11 = vpop.f32.mrf.mxu1  ;;  %v1425_v8 = vld [vmem:[%s2593_s9] ss:$0 sm:$0xff]  ;;  %s2039_s9 = smov [#allocation13]  }
 0x321   :  { %v1062_v12 = vadd.f32 %v1061_v9, %v1060_v7  ;;  %v1427_v9 = vld [vmem:[%s2595_s11] ss:$0 sm:$0xff] }
 0x322   :  { %v1077_v13 = vsel %vm525_vm5, %v1073_v10, 0.0 }
 0x323   :  { %v1063_v14 = vrot.slane %v1062_v12, 4  ;;  %v1078_v15 = vadd.f32 %v1077_v13, %v1076_v20 }
 0x325   :  { %v1064_v42 = vadd.f32 %v1063_v14, %v1062_v12  ;;  %v1079_v43 = vrot.slane %v1078_v15, 4 }
 0x327   :  { %v1065_v44 = vrot.slane %v1064_v42, 2  ;;  %v1080_v16 = vadd.f32 %v1079_v43, %v1078_v15 }
 0x329   :  { %v1066_v45 = vadd.f32 %v1065_v44, %v1064_v42  ;;  %v1081_v47 = vrot.slane %v1080_v16, 2 }
 0x32b   :  { %v1067_v32 = vrot.slane %v1066_v45, 1  ;;  %v1082_v53 = vadd.f32 %v1081_v47, %v1080_v16 }
 0x32d   :  { %v1068_v57 = vadd.f32 %v1067_v32, %v1066_v45  ;;  %v1083_v58 = vrot.slane %v1082_v53, 1 }
 0x32f   :  { %1807 = vmatmul.mubr.f32.vlgmr.msra.gmra.mxu0 %v1068_v57  ;;  %v1084_v61 = vadd.f32 %v1083_v58, %v1082_v53 }
 0x330   :  { %1845 = vmatpush3.bf16.msra.mxu0 %v1305_v54  ;;  %1852 = vmatprep.mubr.msk.bf16.mxu0 %vm2038_vm1, %v2037_v0 }
 0x331   :  { %1842 = vmatmul.mubr.f32.vlgmr.msra.gmra.mxu1 %v1084_v61  ;;  %1846 = vmatprep.subr.bf16.mxu0 %v2037_v0 }
 0x334   :  { %1847 = vmatpush3.bf16.msra.mxu0 %v1304_v19 }
 0x335   :  { %1848 = vmatprep.subr.bf16.mxu0 %v2037_v0 }
 0x338   :  { %1849 = vmatpush3.bf16.msra.mxu0 %v1303_v1 }
 0x339   :  { %1850 = vmatprep.subr.bf16.mxu0 %v2037_v0 }
 0x33c   :  { %1851 = vmatpush3.bf16.msra.mxu0 %v1302_v49 }
 0x33f   :  { %1853 = vmatmul.mubr.msk.bf16.vlgmr.msra.gmra.mxu0 %vm118_vm2, %v1291_v22 }
 0x340   :  { %1856 = vmatprep.mubr.msk.bf16.mxu0 %vm2038_vm1, %v2037_v0 }
 0x347   :  { %1857 = vmatmul.mubr.msk.bf16.gmra.mxu0 %vm118_vm2, %v1292_v27 }
 0x348   :  { %1860 = vmatprep.mubr.msk.bf16.mxu0 %vm2038_vm1, %v2037_v0 }
 0x34f   :  { %1861 = vmatmul.mubr.msk.bf16.gmra.mxu0 %vm118_vm2, %v1293_v28 }
 0x3ef   :  { %v1167_v29 = vpop.f32.mrf.mxu0 }
 0x3f0   :  { %v1241_v30 = vmul.f32 %v1167_v29, %v1167_v29  ;;  %v1247_v36 = vrot.slane %v1167_v29, %v2398_v48 }
 0x3f1   :  { %v1808_v31 = vpop.f32.mrf.mxu0  ;;  %v1237_v33 = vpop.f32.mrf.mxu1 }
 0x3f2   :  { %v1242_v35 = vsub.f32 %v1237_v33, %v1241_v30  ;;  %v1248_v5 = vsub.f32 %v2525_v23, %v1247_v36  ;;  %v1249_v6 = vsub.f32 %v2523_v56, %v1247_v36  ;;  %v1250_v7 = vsub.f32 %v2527_v40, %v1247_v36  ;;  %v1426_v56 = vld [vmem:[%s2594_s10] ss:$0 sm:$0xff]  ;;  %s1398_s10 = sshll.u32 %s2039_s9, 4  ;;  %s1399_s10 = int_to_ptr.vmem [resolvable:$true] %s1398_s10 }
 0x3f3   :  { %v1843_v38 = vpop.f32.mrf.mxu1  ;;  %v1251_v11 = vsub.f32 %v2538_v34, %v1247_v36  ;;  %v1252_v20 = vsub.f32 %v2543_v55, %v1247_v36  ;;  %s2002_s11 = scalar_lea.vmem %s1399_s10, 512  ;;  %p2007_p12 = scmp.lt.s32.totalorder %s1399_s10, %s1399_s10 }
 0x3f4   :  { %v1243_v39 = vmax.f32 %v1242_v35, 0.0  ;;  %p2003_p11 = scmp.ne.s32.totalorder %s1399_s10, %s2002_s11  ;;  %p2008_p13 = scmp.lt.s32.totalorder %s2002_s11, %s2002_s11 }
 0x3f6   :  { %v1253_v50 = vadd.f32 1e-05, %v1243_v39  ;;  %p2009_p0 = por %p2008_p13, %p2007_p12 }
 0x3f8   :  { %1894 = vrsqrt.f32 %v1253_v50  ;;  %p2010_p1 = pnand %p2009_p0, %p2003_p11 }
 0x3ff   :  { %v1356_v41 = vpop.f32.mrf.mxu0 }
 0x400   :  { %v1357_v42 = vadd.f32 %v1427_v9, %v1356_v41 }
 0x401   :  { %v1854_v52 = vpop.f32.mrf.mxu0 }
 0x403   :  { %v1359_v2 = vpop.f32.mrf.mxu0 }
 0x404   :  { %v1360_v16 = vadd.f32 %v1427_v9, %v1359_v2 }
 0x405   :  { %v1895_v3 = vpop.eup %1894  ;;  %v1855_v0 = vpop.f32.mrf.mxu0 }
 0x406   :  { %v1258_v4 = vrot.slane %v1895_v3, %v2398_v48 }
 0x407   :  { %v1364_v10 = vpop.f32.mrf.mxu0 }
 0x408   :  { %v1259_v48 = vmul.f32 %v1258_v4, %v1248_v5  ;;  %v1260_v12 = vmul.f32 %v1258_v4, %v1249_v6  ;;  %v1261_v23 = vmul.f32 %v1258_v4, %v1250_v7  ;;  %v1262_v13 = vmul.f32 %v1258_v4, %v1251_v11 }
 0x409   :  { %v1858_v40 = vpop.f32.mrf.mxu0  ;;  %v1263_v14 = vmul.f32 %v1258_v4, %v1252_v20  ;;  %v1365_v45 = vadd.f32 %v1427_v9, %v1364_v10 }
 0x40a   :  { %v1270_v15 = vmul.f32 %v1425_v8, %v1259_v48  ;;  %v1271_v43 = vmul.f32 %v1425_v8, %v1260_v12  ;;  %v1272_v44 = vmul.f32 %v1425_v8, %v1261_v23  ;;  %v1273_v47 = vmul.f32 %v1425_v8, %v1262_v13 }
 0x40b   :  { %v1367_v34 = vpop.f32.mrf.mxu0  ;;  %v1274_v51 = vmul.f32 %v1425_v8, %v1263_v14 }
 0x40c   :  { %v1281_v55 = vadd.f32 %v1426_v56, %v1270_v15  ;;  %v1282_v17 = vadd.f32 %v1426_v56, %v1271_v43  ;;  %v1283_v32 = vadd.f32 %v1426_v56, %v1272_v44  ;;  %v1368_v53 = vadd.f32 %v1427_v9, %v1367_v34 }
 0x40d   :  { %v1284_v54 = vadd.f32 %v1426_v56, %v1273_v47  ;;  %v1859_v57 = vpop.f32.mrf.mxu0  ;;  %v1285_v19 = vadd.f32 %v1426_v56, %v1274_v51 }
 0x40e   :  { %v1378_v58 = vadd.f32 %v1357_v42, %v1281_v55  ;;  %v1379_v37 = vadd.f32 %v1360_v16, %v1282_v17  ;;  %v1380_v59 = vadd.f32 %v1365_v45, %v1283_v32 }
 0x40f   :  { %v1381_v61 = vadd.f32 %v1368_v53, %v1284_v54  ;;  %v1372_v62 = vpop.f32.mrf.mxu0 }
 0x410   :  { %v1383_v63 = vmax.f32 %v1378_v58, 0.0  ;;  %v1384_v1 = vmax.f32 %v1379_v37, 0.0  ;;  %v1385_v18 = vmax.f32 %v1380_v59, 0.0  ;;  %v1373_v46 = vadd.f32 %v1427_v9, %v1372_v62 }
 0x411   :  { %v1386_v49 = vmax.f32 %v1381_v61, 0.0  ;;  %v1862_v60 = vpop.f32.mrf.mxu0 }
 0x412   :  { %1388 = vst [vmem:[#allocation13] sm:$0xff] %v1383_v63  ;;  %1389 = vst [vmem:[#allocation13 + $0x8] sm:$0xff] %v1384_v1  ;;  %v1382_v21 = vadd.f32 %v1373_v46, %v1285_v19 }
 0x413   :  { %1390 = vst [vmem:[#allocation13 + $0xe] sm:$0xfc] %v1385_v18  ;;  %1391 = vst [vmem:[#allocation13 + $0x16] sm:$0xff] %v1386_v49  ;;  %v1375_v22 = vpop.f32.mrf.mxu0 }
 0x414   :  { %v1387_v24 = vmax.f32 %v1382_v21, 0.0 }
 0x415   :  { %v1863_v26 = vpop.f32.mrf.mxu0 }
 0x416   :  { %1392 = vst [vmem:[#allocation13 + $0x1e] sm:$0x3] %v1387_v24 }
 0x417   :  { %2013 = shalt.err (!%p2010_p1)
}
 0x418   :  { %1404 = dma.vmem_to_hbm [thread:$0]  %s1399_s10, 512, %s2596_s12, [#allocation6], %s2032_s26, %s2032_s26, %s2033_s27  }
 0x419   :  { %2028 = dma.done.wait [#allocation6], 512  }
 0x41a   :  { %2029 = vsyncadd [#allocation6], 4294966784 }
 0x41b   :  { %1408 = vsyncpa [#allocation5], 1 }
 0x41c   :  { %1409 = vsyncpa [#allocation8], 1 }
 0x41d   :  { %1410 = vsyncpa [#allocation11], 1 }
 0x41e   :  { %1411 = vsyncpa [#allocation6], 1 }

</bundles_post_ra>
